<compile_context>
chip_gen: v7x
topology: tpu7x:2x2x1
jax: 0.10.0
libtpu: 0.0.40
codegen_flags: <defaults>
</compile_context>

<pallas_src>
import math

import jax
import jax.numpy as jnp
import numpy as np
from jax.experimental import pallas as pl
from jax.experimental.pallas import tpu as pltpu

_LANE = 128
_SUB = 8

# Batcher odd-even merge sorting network for 8 elements, ascending (19 CEs).
_SORT8 = [
    (0, 1), (2, 3), (0, 2), (1, 3), (1, 2),            # sort 0..3
    (4, 5), (6, 7), (4, 6), (5, 7), (5, 6),            # sort 4..7
    (0, 4), (2, 6), (2, 4), (1, 5), (3, 7), (3, 5),    # odd-even merge
    (1, 2), (3, 4), (5, 6),
]


def _round_up(a, b):
    return (a + b - 1) // b * b


def _cdiv(a, b):
    return (a + b - 1) // b


def _compute_padding(x_shape, k, stride, padding, same):
    """Replicates SConv_2d._padding; returns (left, right, top, bottom)."""
    if same:
        ih, iw = x_shape[2], x_shape[3]
        ph = max(k[0] - stride[0], 0) if ih % stride[0] == 0 else max(k[0] - ih % stride[0], 0)
        pw = max(k[1] - stride[1], 0) if iw % stride[1] == 0 else max(k[1] - iw % stride[1], 0)
        pleft = pw // 2
        pright = pw - pleft
        ptop = ph // 2
        pbot = ph - ptop
        return (pleft, pright, ptop, pbot)
    return (padding, padding, padding, padding)


def _im2col(x, k, stride):
    """x: (B, C, H, W) -> patches (B, k0*k1, C, Ho*Wo), matching torch unfold order."""
    B, C, H, W = x.shape
    kh, kw = k
    sh, sw = stride
    Ho = (H - kh) // sh + 1
    Wo = (W - kw) // sw + 1
    cols = []
    for i in range(kh):
        for j in range(kw):
            cols.append(x[:, :, i:i + (Ho - 1) * sh + 1:sh, j:j + (Wo - 1) * sw + 1:sw])
    p = jnp.stack(cols, axis=1)  # (B, kh*kw, C, Ho, Wo)
    return p.reshape(B, kh * kw, C, Ho * Wo), Ho, Wo


def sconv2d_pallas(x, coefficient, weight, bias, *, kernel_size=3, stride=1,
                   padding=0, same=False, tl_cap=512):
    """SConv_2d forward (k=3) as a Pallas TPU kernel.

    tl_cap: lane-tile width cap (multiple of 128).  512 is a good default on
    all generations; on v6e/v7x with OC <= 128, 1024 amortizes the 256-wide
    MXU better (per-step VMEM is small either way).
    """
    assert kernel_size == 3, "only the k=3 branch is implemented"
    k = (kernel_size, kernel_size)
    st = (stride, stride)
    pads = _compute_padding(x.shape, k, st, padding, same)
    x = jnp.pad(x, ((0, 0), (0, 0), (pads[2], pads[3]), (pads[0], pads[1])))
    B, C, Hp, Wp = x.shape
    OC = weight.shape[0]
    Ho = (Hp - k[0]) // st[0] + 1
    Wo = (Wp - k[1]) // st[1] + 1
    assert Ho > 0 and Wo > 0

    # ---- lane tiling of the flattened padded grid ---------------------------
    # The kernel computes the stride-1 output at EVERY padded-grid anchor
    # (h, w); anchors with w > Wp-3 or h > Hp-3 pull taps that wrap into the
    # next row / below the image, but those are exactly the positions sliced
    # away below.  stride > 1 is handled by subsampling the dense grid
    # afterwards (wasteful for stride > 1, but the module default is 1).
    L = Hp * Wp
    # A tap offset is at most 2*Wp + 2 and shifted windows may read that far
    # into the next lane tile, so the tile must be at least that wide.
    tl_min = max(_LANE, _round_up(2 * Wp + 2, _LANE))
    tl = max(tl_min, min(_round_up(tl_cap, _LANE), _round_up(L, _LANE)))
    # Prefer >= 2 total grid steps so both v7x TensorCores get work (no effect
    # on single-TensorCore v5e/v6e).
    while B * _cdiv(L, tl) < 2 and tl - _LANE >= tl_min:
        tl -= _LANE
    assert tl % _LANE == 0
    Lpad = _round_up(L, tl)
    n_tiles = Lpad // tl

    # Sublane-align the channel dims (zero padding is harmless: padded weight
    # columns/rows are zero, padded output rows are sliced off).
    Cp = _round_up(C, _SUB)
    OCp = _round_up(OC, _SUB)

    x_flat = x.reshape(B, C, L).astype(jnp.float32)
    x_flat = jnp.pad(x_flat, ((0, 0), (0, Cp - C), (0, Lpad - L)))

    # Coefficient rows with the centre output row (index 4) dropped: (8, 9).
    # Held in SMEM; the mix contracts over the 9 taps only, so there is no
    # kron(coef, I_C) and no O(C^2) constant in VMEM.
    coef8 = coefficient[jnp.array([0, 1, 2, 3, 5, 6, 7, 8]), :].astype(jnp.float32)

    # Per-tap conv weights (9, OCp, Cp): w_tap[p][oc, c] = weight[oc, c, p//3, p%3].
    w_tap = jnp.transpose(weight.reshape(OC, C, 9), (2, 0, 1)).astype(jnp.float32)
    w_tap = jnp.pad(w_tap, ((0, 0), (0, OCp - OC), (0, Cp - C)))
    b_col = jnp.pad(bias.astype(jnp.float32).reshape(OC, 1), ((0, OCp - OC), (0, 0)))

    tap_off = [(p // 3) * Wp + (p % 3) for p in range(9)]  # static tap offsets

    def kernel(x_ref, xnext_ref, coef_ref, w_ref, b_ref, o_ref, win_ref):
        # Stitch current + next lane tile into one (Cp, 2*tl) VMEM window so
        # every tap is a plain shifted window read (the halo never crosses
        # more than one tile because tl >= 2*Wp + 2).
        win_ref[:, :tl] = x_ref[0]
        win_ref[:, tl:] = xnext_ref[0]

        def tap(p):
            d = tap_off[p]
            return win_ref[:, d:d + tl]                      # (Cp, tl)

        # Coefficient mix over the 9 taps (VPU: 72 SMEM-scalar * slab FMAs),
        # centre output row already dropped in coef8.
        z = None
        center = None
        for p in range(9):
            t = tap(p)
            if p == 4:
                center = t                                   # pre-mix centre tap
            if z is None:
                z = [coef_ref[i, p] * t for i in range(8)]
            else:
                for i in range(8):
                    z[i] = z[i] + coef_ref[i, p] * t

        # Ascending 8-way sort per (c, n): 19 compare-exchanges on (Cp, tl)
        # slabs, vectorized across channels and lanes.
        for (ia, ib) in _SORT8:
            lo = jnp.minimum(z[ia], z[ib])
            hi = jnp.maximum(z[ia], z[ib])
            z[ia], z[ib] = lo, hi

        # Stride-3 conv, split per tap (no (9C, tl) concatenate): nine
        # accumulating (OCp, Cp) x (Cp, tl) MXU matmuls + bias.
        y = z[:4] + [center] + z[4:]
        acc = jnp.zeros((OCp, tl), jnp.float32)
        for p in range(9):
            acc = acc + jnp.dot(w_ref[p], y[p], preferred_element_type=jnp.float32)
        o_ref[0] = (acc + b_ref[...]).astype(o_ref.dtype)

    out = pl.pallas_call(
        kernel,
        out_shape=jax.ShapeDtypeStruct((B, OCp, Lpad), jnp.float32),
        grid_spec=pltpu.PrefetchScalarGridSpec(
            num_scalar_prefetch=0,
            grid=(B, n_tiles),
            in_specs=[
                pl.BlockSpec((1, Cp, tl), lambda b, n: (b, 0, n)),
                pl.BlockSpec((1, Cp, tl),
                             lambda b, n: (b, 0, jnp.minimum(n + 1, n_tiles - 1))),
                pl.BlockSpec(memory_space=pltpu.MemorySpace.SMEM),        # coef8
                pl.BlockSpec((9, OCp, Cp), lambda b, n: (0, 0, 0)),       # w_tap
                pl.BlockSpec((OCp, 1), lambda b, n: (0, 0)),              # bias
            ],
            out_specs=pl.BlockSpec((1, OCp, tl), lambda b, n: (b, 0, n)),
            scratch_shapes=[pltpu.VMEM((Cp, 2 * tl), jnp.float32)],
        ),
        compiler_params=pltpu.CompilerParams(
            dimension_semantics=("parallel", "parallel"),
            vmem_limit_bytes=32 * 1024 * 1024),
    )(x_flat, x_flat, coef8, w_tap, b_col)

    out = out[:, :OC, :L].reshape(B, OC, Hp, Wp)
    out = out[:, :, :(Ho - 1) * st[0] + 1:st[0], :(Wo - 1) * st[1] + 1:st[1]]
    return out


def sconv2d_ref(x, coefficient, weight, bias, *, kernel_size=3, stride=1,
                padding=0, same=False):
    """Pure-JAX reference that mirrors the PyTorch forward (k=3 branch)."""
    k = (kernel_size, kernel_size)
    st = (stride, stride)
    pads = _compute_padding(x.shape, k, st, padding, same)
    x = jnp.pad(x, ((0, 0), (0, 0), (pads[2], pads[3]), (pads[0], pads[1])))
    p, Ho, Wo = _im2col(x, k, st)                          # (B, 9, C, N)
    B, KK, C, N = p.shape
    OC = weight.shape[0]

    center = p[:, 4:5, :, :]                               # (B, 1, C, N)
    z = jnp.einsum('bjcn,ij->bicn', p, coefficient)        # (B, 9, C, N)
    z = z[:, jnp.array([0, 1, 2, 3, 5, 6, 7, 8]), :, :]    # drop center row
    z = jnp.sort(z, axis=1)
    y = jnp.concatenate([z, center], axis=1)
    y = y[:, jnp.array([0, 1, 2, 3, 8, 4, 5, 6, 7]), :, :]  # (B, 9, C, N)

    wf = weight.reshape(OC, C, KK)                         # (OC, C, 9)
    out = jnp.einsum('ocj,bjcn->bon', wf, y) + bias[None, :, None]
    return out.reshape(B, OC, Ho, Wo)


if __name__ == "__main__":
    B, C, OC, H, W, K = 2, 4, 4, 16, 16, 3

    key = jax.random.PRNGKey(0)
    kx, kc, kw, kb = jax.random.split(key, 4)

    x = jax.random.normal(kx, (B, C, H, W), dtype=jnp.float32)
    coefficient = jax.random.normal(kc, (K * K, K * K), dtype=jnp.float32)

    fan_in = C * K * K
    bound = 1.0 / math.sqrt(fan_in)
    weight = jax.random.uniform(kw, (OC, C, K, K), jnp.float32, -bound, bound)
    bias = jax.random.uniform(kb, (OC,), jnp.float32, -bound, bound)

    out = sconv2d_pallas(x, coefficient, weight, bias,
                         kernel_size=K, stride=1, padding=0, same=False)
    out = jax.block_until_ready(out)

    ref = sconv2d_ref(x, coefficient, weight, bias,
                      kernel_size=K, stride=1, padding=0, same=False)
    ref = jax.block_until_ready(ref)

    np.testing.assert_allclose(np.asarray(out), np.asarray(ref),
                               rtol=2e-3, atol=2e-3)
    print("KERNEL_OK")
</pallas_src>

<mosaic_0001>
module attributes {stable_mosaic.version = 11 : i64} {
  func.func @kernel(%arg0: i32, %arg1: i32, %arg2: memref<1x8x256xf32, #tpu.memory_space<vmem>>, %arg3: memref<1x8x256xf32, #tpu.memory_space<vmem>>, %arg4: memref<8x9xf32, #tpu.memory_space<smem>>, %arg5: memref<9x8x8xf32, #tpu.memory_space<vmem>>, %arg6: memref<8x1xf32, #tpu.memory_space<vmem>>, %arg7: memref<1x8x256xf32, #tpu.memory_space<vmem>>, %arg8: memref<8x512xf32, #tpu.memory_space<vmem>>) attributes {dimension_semantics = [#tpu.dimension_semantics<parallel>, #tpu.dimension_semantics<parallel>], iteration_bounds = array<i64: 2, 1>, scalar_prefetch = 0 : i64, scratch_operands = 1 : i64, tpu.core_type = #tpu.core_type<tc>, window_params = [{transform_indices = @transform_0, window_bounds = array<i64: 1, 8, 256>}, {transform_indices = @transform_1, window_bounds = array<i64: 1, 8, 256>}, {transform_indices = @transform_2, window_bounds = array<i64: 8, 9>}, {pipeline_mode = #tpu.pipeline_mode<synchronous>, transform_indices = @transform_3, window_bounds = array<i64: 9, 8, 8>}, {pipeline_mode = #tpu.pipeline_mode<synchronous>, transform_indices = @transform_4, window_bounds = array<i64: 8, 1>}, {transform_indices = @transform_5, window_bounds = array<i64: 1, 8, 256>}]} {
    %c0 = arith.constant 0 : index
    %c0_0 = arith.constant 0 : index
    %c0_1 = arith.constant 0 : index
    %0 = vector.load %arg2[%c0, %c0_0, %c0_1] : memref<1x8x256xf32, #tpu.memory_space<vmem>>, vector<1x8x256xf32>
    %1 = vector.shape_cast %0 : vector<1x8x256xf32> to vector<8x256xf32>
    %c0_2 = arith.constant 0 : index
    %c0_3 = arith.constant 0 : index
    %2 = vector.load %arg8[%c0_2, %c0_3] : memref<8x512xf32, #tpu.memory_space<vmem>>, vector<8x256xf32>
    tpu.vector_store %arg8[%c0_2, %c0_3], %1 {strides = array<i32>} : memref<8x512xf32, #tpu.memory_space<vmem>>, vector<8x256xf32>,
    %c0_4 = arith.constant 0 : index
    %c0_5 = arith.constant 0 : index
    %c0_6 = arith.constant 0 : index
    %3 = vector.load %arg3[%c0_4, %c0_5, %c0_6] : memref<1x8x256xf32, #tpu.memory_space<vmem>>, vector<1x8x256xf32>
    %4 = vector.shape_cast %3 : vector<1x8x256xf32> to vector<8x256xf32>
    %c0_7 = arith.constant 0 : index
    %c256 = arith.constant 256 : index
    %5 = vector.load %arg8[%c0_7, %c256] : memref<8x512xf32, #tpu.memory_space<vmem>>, vector<8x256xf32>
    tpu.vector_store %arg8[%c0_7, %c256], %4 {strides = array<i32>} : memref<8x512xf32, #tpu.memory_space<vmem>>, vector<8x256xf32>,
    %c0_8 = arith.constant 0 : index
    %c0_9 = arith.constant 0 : index
    %6 = vector.load %arg8[%c0_8, %c0_9] : memref<8x512xf32, #tpu.memory_space<vmem>>, vector<8x256xf32>
    %c0_10 = arith.constant 0 : index
    %c0_11 = arith.constant 0 : index
    %7 = memref.load %arg4[%c0_10, %c0_11] : memref<8x9xf32, #tpu.memory_space<smem>>
    %8 = vector.broadcast %7 : f32 to vector<8x256xf32>
    %9 = arith.mulf %8, %6 : vector<8x256xf32>
    %c1 = arith.constant 1 : index
    %c0_12 = arith.constant 0 : index
    %10 = memref.load %arg4[%c1, %c0_12] : memref<8x9xf32, #tpu.memory_space<smem>>
    %11 = vector.broadcast %10 : f32 to vector<8x256xf32>
    %12 = arith.mulf %11, %6 : vector<8x256xf32>
    %c2 = arith.constant 2 : index
    %c0_13 = arith.constant 0 : index
    %13 = memref.load %arg4[%c2, %c0_13] : memref<8x9xf32, #tpu.memory_space<smem>>
    %14 = vector.broadcast %13 : f32 to vector<8x256xf32>
    %15 = arith.mulf %14, %6 : vector<8x256xf32>
    %c3 = arith.constant 3 : index
    %c0_14 = arith.constant 0 : index
    %16 = memref.load %arg4[%c3, %c0_14] : memref<8x9xf32, #tpu.memory_space<smem>>
    %17 = vector.broadcast %16 : f32 to vector<8x256xf32>
    %18 = arith.mulf %17, %6 : vector<8x256xf32>
    %c4 = arith.constant 4 : index
    %c0_15 = arith.constant 0 : index
    %19 = memref.load %arg4[%c4, %c0_15] : memref<8x9xf32, #tpu.memory_space<smem>>
    %20 = vector.broadcast %19 : f32 to vector<8x256xf32>
    %21 = arith.mulf %20, %6 : vector<8x256xf32>
    %c5 = arith.constant 5 : index
    %c0_16 = arith.constant 0 : index
    %22 = memref.load %arg4[%c5, %c0_16] : memref<8x9xf32, #tpu.memory_space<smem>>
    %23 = vector.broadcast %22 : f32 to vector<8x256xf32>
    %24 = arith.mulf %23, %6 : vector<8x256xf32>
    %c6 = arith.constant 6 : index
    %c0_17 = arith.constant 0 : index
    %25 = memref.load %arg4[%c6, %c0_17] : memref<8x9xf32, #tpu.memory_space<smem>>
    %26 = vector.broadcast %25 : f32 to vector<8x256xf32>
    %27 = arith.mulf %26, %6 : vector<8x256xf32>
    %c7 = arith.constant 7 : index
    %c0_18 = arith.constant 0 : index
    %28 = memref.load %arg4[%c7, %c0_18] : memref<8x9xf32, #tpu.memory_space<smem>>
    %29 = vector.broadcast %28 : f32 to vector<8x256xf32>
    %30 = arith.mulf %29, %6 : vector<8x256xf32>
    %c0_19 = arith.constant 0 : index
    %c1_20 = arith.constant 1 : index
    %31 = vector.load %arg8[%c0_19, %c1_20] : memref<8x512xf32, #tpu.memory_space<vmem>>, vector<8x256xf32>
    %c0_21 = arith.constant 0 : index
    %c1_22 = arith.constant 1 : index
    %32 = memref.load %arg4[%c0_21, %c1_22] : memref<8x9xf32, #tpu.memory_space<smem>>
    %33 = vector.broadcast %32 : f32 to vector<8x256xf32>
    %34 = arith.mulf %33, %31 : vector<8x256xf32>
    %35 = arith.addf %9, %34 : vector<8x256xf32>
    %c1_23 = arith.constant 1 : index
    %c1_24 = arith.constant 1 : index
    %36 = memref.load %arg4[%c1_23, %c1_24] : memref<8x9xf32, #tpu.memory_space<smem>>
    %37 = vector.broadcast %36 : f32 to vector<8x256xf32>
    %38 = arith.mulf %37, %31 : vector<8x256xf32>
    %39 = arith.addf %12, %38 : vector<8x256xf32>
    %c2_25 = arith.constant 2 : index
    %c1_26 = arith.constant 1 : index
    %40 = memref.load %arg4[%c2_25, %c1_26] : memref<8x9xf32, #tpu.memory_space<smem>>
    %41 = vector.broadcast %40 : f32 to vector<8x256xf32>
    %42 = arith.mulf %41, %31 : vector<8x256xf32>
    %43 = arith.addf %15, %42 : vector<8x256xf32>
    %c3_27 = arith.constant 3 : index
    %c1_28 = arith.constant 1 : index
    %44 = memref.load %arg4[%c3_27, %c1_28] : memref<8x9xf32, #tpu.memory_space<smem>>
    %45 = vector.broadcast %44 : f32 to vector<8x256xf32>
    %46 = arith.mulf %45, %31 : vector<8x256xf32>
    %47 = arith.addf %18, %46 : vector<8x256xf32>
    %c4_29 = arith.constant 4 : index
    %c1_30 = arith.constant 1 : index
    %48 = memref.load %arg4[%c4_29, %c1_30] : memref<8x9xf32, #tpu.memory_space<smem>>
    %49 = vector.broadcast %48 : f32 to vector<8x256xf32>
    %50 = arith.mulf %49, %31 : vector<8x256xf32>
    %51 = arith.addf %21, %50 : vector<8x256xf32>
    %c5_31 = arith.constant 5 : index
    %c1_32 = arith.constant 1 : index
    %52 = memref.load %arg4[%c5_31, %c1_32] : memref<8x9xf32, #tpu.memory_space<smem>>
    %53 = vector.broadcast %52 : f32 to vector<8x256xf32>
    %54 = arith.mulf %53, %31 : vector<8x256xf32>
    %55 = arith.addf %24, %54 : vector<8x256xf32>
    %c6_33 = arith.constant 6 : index
    %c1_34 = arith.constant 1 : index
    %56 = memref.load %arg4[%c6_33, %c1_34] : memref<8x9xf32, #tpu.memory_space<smem>>
    %57 = vector.broadcast %56 : f32 to vector<8x256xf32>
    %58 = arith.mulf %57, %31 : vector<8x256xf32>
    %59 = arith.addf %27, %58 : vector<8x256xf32>
    %c7_35 = arith.constant 7 : index
    %c1_36 = arith.constant 1 : index
    %60 = memref.load %arg4[%c7_35, %c1_36] : memref<8x9xf32, #tpu.memory_space<smem>>
    %61 = vector.broadcast %60 : f32 to vector<8x256xf32>
    %62 = arith.mulf %61, %31 : vector<8x256xf32>
    %63 = arith.addf %30, %62 : vector<8x256xf32>
    %c0_37 = arith.constant 0 : index
    %c2_38 = arith.constant 2 : index
    %64 = vector.load %arg8[%c0_37, %c2_38] : memref<8x512xf32, #tpu.memory_space<vmem>>, vector<8x256xf32>
    %c0_39 = arith.constant 0 : index
    %c2_40 = arith.constant 2 : index
    %65 = memref.load %arg4[%c0_39, %c2_40] : memref<8x9xf32, #tpu.memory_space<smem>>
    %66 = vector.broadcast %65 : f32 to vector<8x256xf32>
    %67 = arith.mulf %66, %64 : vector<8x256xf32>
    %68 = arith.addf %35, %67 : vector<8x256xf32>
    %c1_41 = arith.constant 1 : index
    %c2_42 = arith.constant 2 : index
    %69 = memref.load %arg4[%c1_41, %c2_42] : memref<8x9xf32, #tpu.memory_space<smem>>
    %70 = vector.broadcast %69 : f32 to vector<8x256xf32>
    %71 = arith.mulf %70, %64 : vector<8x256xf32>
    %72 = arith.addf %39, %71 : vector<8x256xf32>
    %c2_43 = arith.constant 2 : index
    %c2_44 = arith.constant 2 : index
    %73 = memref.load %arg4[%c2_43, %c2_44] : memref<8x9xf32, #tpu.memory_space<smem>>
    %74 = vector.broadcast %73 : f32 to vector<8x256xf32>
    %75 = arith.mulf %74, %64 : vector<8x256xf32>
    %76 = arith.addf %43, %75 : vector<8x256xf32>
    %c3_45 = arith.constant 3 : index
    %c2_46 = arith.constant 2 : index
    %77 = memref.load %arg4[%c3_45, %c2_46] : memref<8x9xf32, #tpu.memory_space<smem>>
    %78 = vector.broadcast %77 : f32 to vector<8x256xf32>
    %79 = arith.mulf %78, %64 : vector<8x256xf32>
    %80 = arith.addf %47, %79 : vector<8x256xf32>
    %c4_47 = arith.constant 4 : index
    %c2_48 = arith.constant 2 : index
    %81 = memref.load %arg4[%c4_47, %c2_48] : memref<8x9xf32, #tpu.memory_space<smem>>
    %82 = vector.broadcast %81 : f32 to vector<8x256xf32>
    %83 = arith.mulf %82, %64 : vector<8x256xf32>
    %84 = arith.addf %51, %83 : vector<8x256xf32>
    %c5_49 = arith.constant 5 : index
    %c2_50 = arith.constant 2 : index
    %85 = memref.load %arg4[%c5_49, %c2_50] : memref<8x9xf32, #tpu.memory_space<smem>>
    %86 = vector.broadcast %85 : f32 to vector<8x256xf32>
    %87 = arith.mulf %86, %64 : vector<8x256xf32>
    %88 = arith.addf %55, %87 : vector<8x256xf32>
    %c6_51 = arith.constant 6 : index
    %c2_52 = arith.constant 2 : index
    %89 = memref.load %arg4[%c6_51, %c2_52] : memref<8x9xf32, #tpu.memory_space<smem>>
    %90 = vector.broadcast %89 : f32 to vector<8x256xf32>
    %91 = arith.mulf %90, %64 : vector<8x256xf32>
    %92 = arith.addf %59, %91 : vector<8x256xf32>
    %c7_53 = arith.constant 7 : index
    %c2_54 = arith.constant 2 : index
    %93 = memref.load %arg4[%c7_53, %c2_54] : memref<8x9xf32, #tpu.memory_space<smem>>
    %94 = vector.broadcast %93 : f32 to vector<8x256xf32>
    %95 = arith.mulf %94, %64 : vector<8x256xf32>
    %96 = arith.addf %63, %95 : vector<8x256xf32>
    %c0_55 = arith.constant 0 : index
    %c16 = arith.constant 16 : index
    %97 = vector.load %arg8[%c0_55, %c16] : memref<8x512xf32, #tpu.memory_space<vmem>>, vector<8x256xf32>
    %c0_56 = arith.constant 0 : index
    %c3_57 = arith.constant 3 : index
    %98 = memref.load %arg4[%c0_56, %c3_57] : memref<8x9xf32, #tpu.memory_space<smem>>
    %99 = vector.broadcast %98 : f32 to vector<8x256xf32>
    %100 = arith.mulf %99, %97 : vector<8x256xf32>
    %101 = arith.addf %68, %100 : vector<8x256xf32>
    %c1_58 = arith.constant 1 : index
    %c3_59 = arith.constant 3 : index
    %102 = memref.load %arg4[%c1_58, %c3_59] : memref<8x9xf32, #tpu.memory_space<smem>>
    %103 = vector.broadcast %102 : f32 to vector<8x256xf32>
    %104 = arith.mulf %103, %97 : vector<8x256xf32>
    %105 = arith.addf %72, %104 : vector<8x256xf32>
    %c2_60 = arith.constant 2 : index
    %c3_61 = arith.constant 3 : index
    %106 = memref.load %arg4[%c2_60, %c3_61] : memref<8x9xf32, #tpu.memory_space<smem>>
    %107 = vector.broadcast %106 : f32 to vector<8x256xf32>
    %108 = arith.mulf %107, %97 : vector<8x256xf32>
    %109 = arith.addf %76, %108 : vector<8x256xf32>
    %c3_62 = arith.constant 3 : index
    %c3_63 = arith.constant 3 : index
    %110 = memref.load %arg4[%c3_62, %c3_63] : memref<8x9xf32, #tpu.memory_space<smem>>
    %111 = vector.broadcast %110 : f32 to vector<8x256xf32>
    %112 = arith.mulf %111, %97 : vector<8x256xf32>
    %113 = arith.addf %80, %112 : vector<8x256xf32>
    %c4_64 = arith.constant 4 : index
    %c3_65 = arith.constant 3 : index
    %114 = memref.load %arg4[%c4_64, %c3_65] : memref<8x9xf32, #tpu.memory_space<smem>>
    %115 = vector.broadcast %114 : f32 to vector<8x256xf32>
    %116 = arith.mulf %115, %97 : vector<8x256xf32>
    %117 = arith.addf %84, %116 : vector<8x256xf32>
    %c5_66 = arith.constant 5 : index
    %c3_67 = arith.constant 3 : index
    %118 = memref.load %arg4[%c5_66, %c3_67] : memref<8x9xf32, #tpu.memory_space<smem>>
    %119 = vector.broadcast %118 : f32 to vector<8x256xf32>
    %120 = arith.mulf %119, %97 : vector<8x256xf32>
    %121 = arith.addf %88, %120 : vector<8x256xf32>
    %c6_68 = arith.constant 6 : index
    %c3_69 = arith.constant 3 : index
    %122 = memref.load %arg4[%c6_68, %c3_69] : memref<8x9xf32, #tpu.memory_space<smem>>
    %123 = vector.broadcast %122 : f32 to vector<8x256xf32>
    %124 = arith.mulf %123, %97 : vector<8x256xf32>
    %125 = arith.addf %92, %124 : vector<8x256xf32>
    %c7_70 = arith.constant 7 : index
    %c3_71 = arith.constant 3 : index
    %126 = memref.load %arg4[%c7_70, %c3_71] : memref<8x9xf32, #tpu.memory_space<smem>>
    %127 = vector.broadcast %126 : f32 to vector<8x256xf32>
    %128 = arith.mulf %127, %97 : vector<8x256xf32>
    %129 = arith.addf %96, %128 : vector<8x256xf32>
    %c0_72 = arith.constant 0 : index
    %c17 = arith.constant 17 : index
    %130 = vector.load %arg8[%c0_72, %c17] : memref<8x512xf32, #tpu.memory_space<vmem>>, vector<8x256xf32>
    %c0_73 = arith.constant 0 : index
    %c4_74 = arith.constant 4 : index
    %131 = memref.load %arg4[%c0_73, %c4_74] : memref<8x9xf32, #tpu.memory_space<smem>>
    %132 = vector.broadcast %131 : f32 to vector<8x256xf32>
    %133 = arith.mulf %132, %130 : vector<8x256xf32>
    %134 = arith.addf %101, %133 : vector<8x256xf32>
    %c1_75 = arith.constant 1 : index
    %c4_76 = arith.constant 4 : index
    %135 = memref.load %arg4[%c1_75, %c4_76] : memref<8x9xf32, #tpu.memory_space<smem>>
    %136 = vector.broadcast %135 : f32 to vector<8x256xf32>
    %137 = arith.mulf %136, %130 : vector<8x256xf32>
    %138 = arith.addf %105, %137 : vector<8x256xf32>
    %c2_77 = arith.constant 2 : index
    %c4_78 = arith.constant 4 : index
    %139 = memref.load %arg4[%c2_77, %c4_78] : memref<8x9xf32, #tpu.memory_space<smem>>
    %140 = vector.broadcast %139 : f32 to vector<8x256xf32>
    %141 = arith.mulf %140, %130 : vector<8x256xf32>
    %142 = arith.addf %109, %141 : vector<8x256xf32>
    %c3_79 = arith.constant 3 : index
    %c4_80 = arith.constant 4 : index
    %143 = memref.load %arg4[%c3_79, %c4_80] : memref<8x9xf32, #tpu.memory_space<smem>>
    %144 = vector.broadcast %143 : f32 to vector<8x256xf32>
    %145 = arith.mulf %144, %130 : vector<8x256xf32>
    %146 = arith.addf %113, %145 : vector<8x256xf32>
    %c4_81 = arith.constant 4 : index
    %c4_82 = arith.constant 4 : index
    %147 = memref.load %arg4[%c4_81, %c4_82] : memref<8x9xf32, #tpu.memory_space<smem>>
    %148 = vector.broadcast %147 : f32 to vector<8x256xf32>
    %149 = arith.mulf %148, %130 : vector<8x256xf32>
    %150 = arith.addf %117, %149 : vector<8x256xf32>
    %c5_83 = arith.constant 5 : index
    %c4_84 = arith.constant 4 : index
    %151 = memref.load %arg4[%c5_83, %c4_84] : memref<8x9xf32, #tpu.memory_space<smem>>
    %152 = vector.broadcast %151 : f32 to vector<8x256xf32>
    %153 = arith.mulf %152, %130 : vector<8x256xf32>
    %154 = arith.addf %121, %153 : vector<8x256xf32>
    %c6_85 = arith.constant 6 : index
    %c4_86 = arith.constant 4 : index
    %155 = memref.load %arg4[%c6_85, %c4_86] : memref<8x9xf32, #tpu.memory_space<smem>>
    %156 = vector.broadcast %155 : f32 to vector<8x256xf32>
    %157 = arith.mulf %156, %130 : vector<8x256xf32>
    %158 = arith.addf %125, %157 : vector<8x256xf32>
    %c7_87 = arith.constant 7 : index
    %c4_88 = arith.constant 4 : index
    %159 = memref.load %arg4[%c7_87, %c4_88] : memref<8x9xf32, #tpu.memory_space<smem>>
    %160 = vector.broadcast %159 : f32 to vector<8x256xf32>
    %161 = arith.mulf %160, %130 : vector<8x256xf32>
    %162 = arith.addf %129, %161 : vector<8x256xf32>
    %c0_89 = arith.constant 0 : index
    %c18 = arith.constant 18 : index
    %163 = vector.load %arg8[%c0_89, %c18] : memref<8x512xf32, #tpu.memory_space<vmem>>, vector<8x256xf32>
    %c0_90 = arith.constant 0 : index
    %c5_91 = arith.constant 5 : index
    %164 = memref.load %arg4[%c0_90, %c5_91] : memref<8x9xf32, #tpu.memory_space<smem>>
    %165 = vector.broadcast %164 : f32 to vector<8x256xf32>
    %166 = arith.mulf %165, %163 : vector<8x256xf32>
    %167 = arith.addf %134, %166 : vector<8x256xf32>
    %c1_92 = arith.constant 1 : index
    %c5_93 = arith.constant 5 : index
    %168 = memref.load %arg4[%c1_92, %c5_93] : memref<8x9xf32, #tpu.memory_space<smem>>
    %169 = vector.broadcast %168 : f32 to vector<8x256xf32>
    %170 = arith.mulf %169, %163 : vector<8x256xf32>
    %171 = arith.addf %138, %170 : vector<8x256xf32>
    %c2_94 = arith.constant 2 : index
    %c5_95 = arith.constant 5 : index
    %172 = memref.load %arg4[%c2_94, %c5_95] : memref<8x9xf32, #tpu.memory_space<smem>>
    %173 = vector.broadcast %172 : f32 to vector<8x256xf32>
    %174 = arith.mulf %173, %163 : vector<8x256xf32>
    %175 = arith.addf %142, %174 : vector<8x256xf32>
    %c3_96 = arith.constant 3 : index
    %c5_97 = arith.constant 5 : index
    %176 = memref.load %arg4[%c3_96, %c5_97] : memref<8x9xf32, #tpu.memory_space<smem>>
    %177 = vector.broadcast %176 : f32 to vector<8x256xf32>
    %178 = arith.mulf %177, %163 : vector<8x256xf32>
    %179 = arith.addf %146, %178 : vector<8x256xf32>
    %c4_98 = arith.constant 4 : index
    %c5_99 = arith.constant 5 : index
    %180 = memref.load %arg4[%c4_98, %c5_99] : memref<8x9xf32, #tpu.memory_space<smem>>
    %181 = vector.broadcast %180 : f32 to vector<8x256xf32>
    %182 = arith.mulf %181, %163 : vector<8x256xf32>
    %183 = arith.addf %150, %182 : vector<8x256xf32>
    %c5_100 = arith.constant 5 : index
    %c5_101 = arith.constant 5 : index
    %184 = memref.load %arg4[%c5_100, %c5_101] : memref<8x9xf32, #tpu.memory_space<smem>>
    %185 = vector.broadcast %184 : f32 to vector<8x256xf32>
    %186 = arith.mulf %185, %163 : vector<8x256xf32>
    %187 = arith.addf %154, %186 : vector<8x256xf32>
    %c6_102 = arith.constant 6 : index
    %c5_103 = arith.constant 5 : index
    %188 = memref.load %arg4[%c6_102, %c5_103] : memref<8x9xf32, #tpu.memory_space<smem>>
    %189 = vector.broadcast %188 : f32 to vector<8x256xf32>
    %190 = arith.mulf %189, %163 : vector<8x256xf32>
    %191 = arith.addf %158, %190 : vector<8x256xf32>
    %c7_104 = arith.constant 7 : index
    %c5_105 = arith.constant 5 : index
    %192 = memref.load %arg4[%c7_104, %c5_105] : memref<8x9xf32, #tpu.memory_space<smem>>
    %193 = vector.broadcast %192 : f32 to vector<8x256xf32>
    %194 = arith.mulf %193, %163 : vector<8x256xf32>
    %195 = arith.addf %162, %194 : vector<8x256xf32>
    %c0_106 = arith.constant 0 : index
    %c32 = arith.constant 32 : index
    %196 = vector.load %arg8[%c0_106, %c32] : memref<8x512xf32, #tpu.memory_space<vmem>>, vector<8x256xf32>
    %c0_107 = arith.constant 0 : index
    %c6_108 = arith.constant 6 : index
    %197 = memref.load %arg4[%c0_107, %c6_108] : memref<8x9xf32, #tpu.memory_space<smem>>
    %198 = vector.broadcast %197 : f32 to vector<8x256xf32>
    %199 = arith.mulf %198, %196 : vector<8x256xf32>
    %200 = arith.addf %167, %199 : vector<8x256xf32>
    %c1_109 = arith.constant 1 : index
    %c6_110 = arith.constant 6 : index
    %201 = memref.load %arg4[%c1_109, %c6_110] : memref<8x9xf32, #tpu.memory_space<smem>>
    %202 = vector.broadcast %201 : f32 to vector<8x256xf32>
    %203 = arith.mulf %202, %196 : vector<8x256xf32>
    %204 = arith.addf %171, %203 : vector<8x256xf32>
    %c2_111 = arith.constant 2 : index
    %c6_112 = arith.constant 6 : index
    %205 = memref.load %arg4[%c2_111, %c6_112] : memref<8x9xf32, #tpu.memory_space<smem>>
    %206 = vector.broadcast %205 : f32 to vector<8x256xf32>
    %207 = arith.mulf %206, %196 : vector<8x256xf32>
    %208 = arith.addf %175, %207 : vector<8x256xf32>
    %c3_113 = arith.constant 3 : index
    %c6_114 = arith.constant 6 : index
    %209 = memref.load %arg4[%c3_113, %c6_114] : memref<8x9xf32, #tpu.memory_space<smem>>
    %210 = vector.broadcast %209 : f32 to vector<8x256xf32>
    %211 = arith.mulf %210, %196 : vector<8x256xf32>
    %212 = arith.addf %179, %211 : vector<8x256xf32>
    %c4_115 = arith.constant 4 : index
    %c6_116 = arith.constant 6 : index
    %213 = memref.load %arg4[%c4_115, %c6_116] : memref<8x9xf32, #tpu.memory_space<smem>>
    %214 = vector.broadcast %213 : f32 to vector<8x256xf32>
    %215 = arith.mulf %214, %196 : vector<8x256xf32>
    %216 = arith.addf %183, %215 : vector<8x256xf32>
    %c5_117 = arith.constant 5 : index
    %c6_118 = arith.constant 6 : index
    %217 = memref.load %arg4[%c5_117, %c6_118] : memref<8x9xf32, #tpu.memory_space<smem>>
    %218 = vector.broadcast %217 : f32 to vector<8x256xf32>
    %219 = arith.mulf %218, %196 : vector<8x256xf32>
    %220 = arith.addf %187, %219 : vector<8x256xf32>
    %c6_119 = arith.constant 6 : index
    %c6_120 = arith.constant 6 : index
    %221 = memref.load %arg4[%c6_119, %c6_120] : memref<8x9xf32, #tpu.memory_space<smem>>
    %222 = vector.broadcast %221 : f32 to vector<8x256xf32>
    %223 = arith.mulf %222, %196 : vector<8x256xf32>
    %224 = arith.addf %191, %223 : vector<8x256xf32>
    %c7_121 = arith.constant 7 : index
    %c6_122 = arith.constant 6 : index
    %225 = memref.load %arg4[%c7_121, %c6_122] : memref<8x9xf32, #tpu.memory_space<smem>>
    %226 = vector.broadcast %225 : f32 to vector<8x256xf32>
    %227 = arith.mulf %226, %196 : vector<8x256xf32>
    %228 = arith.addf %195, %227 : vector<8x256xf32>
    %c0_123 = arith.constant 0 : index
    %c33 = arith.constant 33 : index
    %229 = vector.load %arg8[%c0_123, %c33] : memref<8x512xf32, #tpu.memory_space<vmem>>, vector<8x256xf32>
    %c0_124 = arith.constant 0 : index
    %c7_125 = arith.constant 7 : index
    %230 = memref.load %arg4[%c0_124, %c7_125] : memref<8x9xf32, #tpu.memory_space<smem>>
    %231 = vector.broadcast %230 : f32 to vector<8x256xf32>
    %232 = arith.mulf %231, %229 : vector<8x256xf32>
    %233 = arith.addf %200, %232 : vector<8x256xf32>
    %c1_126 = arith.constant 1 : index
    %c7_127 = arith.constant 7 : index
    %234 = memref.load %arg4[%c1_126, %c7_127] : memref<8x9xf32, #tpu.memory_space<smem>>
    %235 = vector.broadcast %234 : f32 to vector<8x256xf32>
    %236 = arith.mulf %235, %229 : vector<8x256xf32>
    %237 = arith.addf %204, %236 : vector<8x256xf32>
    %c2_128 = arith.constant 2 : index
    %c7_129 = arith.constant 7 : index
    %238 = memref.load %arg4[%c2_128, %c7_129] : memref<8x9xf32, #tpu.memory_space<smem>>
    %239 = vector.broadcast %238 : f32 to vector<8x256xf32>
    %240 = arith.mulf %239, %229 : vector<8x256xf32>
    %241 = arith.addf %208, %240 : vector<8x256xf32>
    %c3_130 = arith.constant 3 : index
    %c7_131 = arith.constant 7 : index
    %242 = memref.load %arg4[%c3_130, %c7_131] : memref<8x9xf32, #tpu.memory_space<smem>>
    %243 = vector.broadcast %242 : f32 to vector<8x256xf32>
    %244 = arith.mulf %243, %229 : vector<8x256xf32>
    %245 = arith.addf %212, %244 : vector<8x256xf32>
    %c4_132 = arith.constant 4 : index
    %c7_133 = arith.constant 7 : index
    %246 = memref.load %arg4[%c4_132, %c7_133] : memref<8x9xf32, #tpu.memory_space<smem>>
    %247 = vector.broadcast %246 : f32 to vector<8x256xf32>
    %248 = arith.mulf %247, %229 : vector<8x256xf32>
    %249 = arith.addf %216, %248 : vector<8x256xf32>
    %c5_134 = arith.constant 5 : index
    %c7_135 = arith.constant 7 : index
    %250 = memref.load %arg4[%c5_134, %c7_135] : memref<8x9xf32, #tpu.memory_space<smem>>
    %251 = vector.broadcast %250 : f32 to vector<8x256xf32>
    %252 = arith.mulf %251, %229 : vector<8x256xf32>
    %253 = arith.addf %220, %252 : vector<8x256xf32>
    %c6_136 = arith.constant 6 : index
    %c7_137 = arith.constant 7 : index
    %254 = memref.load %arg4[%c6_136, %c7_137] : memref<8x9xf32, #tpu.memory_space<smem>>
    %255 = vector.broadcast %254 : f32 to vector<8x256xf32>
    %256 = arith.mulf %255, %229 : vector<8x256xf32>
    %257 = arith.addf %224, %256 : vector<8x256xf32>
    %c7_138 = arith.constant 7 : index
    %c7_139 = arith.constant 7 : index
    %258 = memref.load %arg4[%c7_138, %c7_139] : memref<8x9xf32, #tpu.memory_space<smem>>
    %259 = vector.broadcast %258 : f32 to vector<8x256xf32>
    %260 = arith.mulf %259, %229 : vector<8x256xf32>
    %261 = arith.addf %228, %260 : vector<8x256xf32>
    %c0_140 = arith.constant 0 : index
    %c34 = arith.constant 34 : index
    %262 = vector.load %arg8[%c0_140, %c34] : memref<8x512xf32, #tpu.memory_space<vmem>>, vector<8x256xf32>
    %c0_141 = arith.constant 0 : index
    %c8 = arith.constant 8 : index
    %263 = memref.load %arg4[%c0_141, %c8] : memref<8x9xf32, #tpu.memory_space<smem>>
    %264 = vector.broadcast %263 : f32 to vector<8x256xf32>
    %265 = arith.mulf %264, %262 : vector<8x256xf32>
    %266 = arith.addf %233, %265 : vector<8x256xf32>
    %c1_142 = arith.constant 1 : index
    %c8_143 = arith.constant 8 : index
    %267 = memref.load %arg4[%c1_142, %c8_143] : memref<8x9xf32, #tpu.memory_space<smem>>
    %268 = vector.broadcast %267 : f32 to vector<8x256xf32>
    %269 = arith.mulf %268, %262 : vector<8x256xf32>
    %270 = arith.addf %237, %269 : vector<8x256xf32>
    %c2_144 = arith.constant 2 : index
    %c8_145 = arith.constant 8 : index
    %271 = memref.load %arg4[%c2_144, %c8_145] : memref<8x9xf32, #tpu.memory_space<smem>>
    %272 = vector.broadcast %271 : f32 to vector<8x256xf32>
    %273 = arith.mulf %272, %262 : vector<8x256xf32>
    %274 = arith.addf %241, %273 : vector<8x256xf32>
    %c3_146 = arith.constant 3 : index
    %c8_147 = arith.constant 8 : index
    %275 = memref.load %arg4[%c3_146, %c8_147] : memref<8x9xf32, #tpu.memory_space<smem>>
    %276 = vector.broadcast %275 : f32 to vector<8x256xf32>
    %277 = arith.mulf %276, %262 : vector<8x256xf32>
    %278 = arith.addf %245, %277 : vector<8x256xf32>
    %c4_148 = arith.constant 4 : index
    %c8_149 = arith.constant 8 : index
    %279 = memref.load %arg4[%c4_148, %c8_149] : memref<8x9xf32, #tpu.memory_space<smem>>
    %280 = vector.broadcast %279 : f32 to vector<8x256xf32>
    %281 = arith.mulf %280, %262 : vector<8x256xf32>
    %282 = arith.addf %249, %281 : vector<8x256xf32>
    %c5_150 = arith.constant 5 : index
    %c8_151 = arith.constant 8 : index
    %283 = memref.load %arg4[%c5_150, %c8_151] : memref<8x9xf32, #tpu.memory_space<smem>>
    %284 = vector.broadcast %283 : f32 to vector<8x256xf32>
    %285 = arith.mulf %284, %262 : vector<8x256xf32>
    %286 = arith.addf %253, %285 : vector<8x256xf32>
    %c6_152 = arith.constant 6 : index
    %c8_153 = arith.constant 8 : index
    %287 = memref.load %arg4[%c6_152, %c8_153] : memref<8x9xf32, #tpu.memory_space<smem>>
    %288 = vector.broadcast %287 : f32 to vector<8x256xf32>
    %289 = arith.mulf %288, %262 : vector<8x256xf32>
    %290 = arith.addf %257, %289 : vector<8x256xf32>
    %c7_154 = arith.constant 7 : index
    %c8_155 = arith.constant 8 : index
    %291 = memref.load %arg4[%c7_154, %c8_155] : memref<8x9xf32, #tpu.memory_space<smem>>
    %292 = vector.broadcast %291 : f32 to vector<8x256xf32>
    %293 = arith.mulf %292, %262 : vector<8x256xf32>
    %294 = arith.addf %261, %293 : vector<8x256xf32>
    %295 = arith.minimumf %266, %270 : vector<8x256xf32>
    %296 = arith.maximumf %266, %270 : vector<8x256xf32>
    %297 = arith.minimumf %274, %278 : vector<8x256xf32>
    %298 = arith.maximumf %274, %278 : vector<8x256xf32>
    %299 = arith.minimumf %295, %297 : vector<8x256xf32>
    %300 = arith.maximumf %295, %297 : vector<8x256xf32>
    %301 = arith.minimumf %296, %298 : vector<8x256xf32>
    %302 = arith.maximumf %296, %298 : vector<8x256xf32>
    %303 = arith.minimumf %301, %300 : vector<8x256xf32>
    %304 = arith.maximumf %301, %300 : vector<8x256xf32>
    %305 = arith.minimumf %282, %286 : vector<8x256xf32>
    %306 = arith.maximumf %282, %286 : vector<8x256xf32>
    %307 = arith.minimumf %290, %294 : vector<8x256xf32>
    %308 = arith.maximumf %290, %294 : vector<8x256xf32>
    %309 = arith.minimumf %305, %307 : vector<8x256xf32>
    %310 = arith.maximumf %305, %307 : vector<8x256xf32>
    %311 = arith.minimumf %306, %308 : vector<8x256xf32>
    %312 = arith.maximumf %306, %308 : vector<8x256xf32>
    %313 = arith.minimumf %311, %310 : vector<8x256xf32>
    %314 = arith.maximumf %311, %310 : vector<8x256xf32>
    %315 = arith.minimumf %299, %309 : vector<8x256xf32>
    %316 = arith.maximumf %299, %309 : vector<8x256xf32>
    %317 = arith.minimumf %304, %314 : vector<8x256xf32>
    %318 = arith.maximumf %304, %314 : vector<8x256xf32>
    %319 = arith.minimumf %317, %316 : vector<8x256xf32>
    %320 = arith.maximumf %317, %316 : vector<8x256xf32>
    %321 = arith.minimumf %303, %313 : vector<8x256xf32>
    %322 = arith.maximumf %303, %313 : vector<8x256xf32>
    %323 = arith.minimumf %302, %312 : vector<8x256xf32>
    %324 = arith.maximumf %302, %312 : vector<8x256xf32>
    %325 = arith.minimumf %323, %322 : vector<8x256xf32>
    %326 = arith.maximumf %323, %322 : vector<8x256xf32>
    %327 = arith.minimumf %321, %319 : vector<8x256xf32>
    %328 = arith.maximumf %321, %319 : vector<8x256xf32>
    %329 = arith.minimumf %325, %320 : vector<8x256xf32>
    %330 = arith.maximumf %325, %320 : vector<8x256xf32>
    %331 = arith.minimumf %326, %318 : vector<8x256xf32>
    %332 = arith.maximumf %326, %318 : vector<8x256xf32>
    %cst = arith.constant 0.000000e+00 : f32
    %333 = vector.broadcast %cst : f32 to vector<8x256xf32>
    %c0_156 = arith.constant 0 : index
    %c0_157 = arith.constant 0 : index
    %c0_158 = arith.constant 0 : index
    %334 = vector.load %arg5[%c0_156, %c0_157, %c0_158] : memref<9x8x8xf32, #tpu.memory_space<vmem>>, vector<1x8x8xf32>
    %335 = vector.shape_cast %334 : vector<1x8x8xf32> to vector<8x8xf32>
    %cst_159 = arith.constant dense<0.000000e+00> : vector<8x256xf32>
    %336 = tpu.matmul %335, %315, %cst_159 {dimension_numbers = #tpu.dot_dimension_numbers<[1], [0], [0], [1], [0, 0, 1, 1], [], []>} : vector<8x8xf32>, vector<8x256xf32>, vector<8x256xf32> -> vector<8x256xf32>
    %337 = arith.addf %333, %336 : vector<8x256xf32>
    %c1_160 = arith.constant 1 : index
    %c0_161 = arith.constant 0 : index
    %c0_162 = arith.constant 0 : index
    %338 = vector.load %arg5[%c1_160, %c0_161, %c0_162] : memref<9x8x8xf32, #tpu.memory_space<vmem>>, vector<1x8x8xf32>
    %339 = vector.shape_cast %338 : vector<1x8x8xf32> to vector<8x8xf32>
    %cst_163 = arith.constant dense<0.000000e+00> : vector<8x256xf32>
    %340 = tpu.matmul %339, %327, %cst_163 {dimension_numbers = #tpu.dot_dimension_numbers<[1], [0], [0], [1], [0, 0, 1, 1], [], []>} : vector<8x8xf32>, vector<8x256xf32>, vector<8x256xf32> -> vector<8x256xf32>
    %341 = arith.addf %337, %340 : vector<8x256xf32>
    %c2_164 = arith.constant 2 : index
    %c0_165 = arith.constant 0 : index
    %c0_166 = arith.constant 0 : index
    %342 = vector.load %arg5[%c2_164, %c0_165, %c0_166] : memref<9x8x8xf32, #tpu.memory_space<vmem>>, vector<1x8x8xf32>
    %343 = vector.shape_cast %342 : vector<1x8x8xf32> to vector<8x8xf32>
    %cst_167 = arith.constant dense<0.000000e+00> : vector<8x256xf32>
    %344 = tpu.matmul %343, %328, %cst_167 {dimension_numbers = #tpu.dot_dimension_numbers<[1], [0], [0], [1], [0, 0, 1, 1], [], []>} : vector<8x8xf32>, vector<8x256xf32>, vector<8x256xf32> -> vector<8x256xf32>
    %345 = arith.addf %341, %344 : vector<8x256xf32>
    %c3_168 = arith.constant 3 : index
    %c0_169 = arith.constant 0 : index
    %c0_170 = arith.constant 0 : index
    %346 = vector.load %arg5[%c3_168, %c0_169, %c0_170] : memref<9x8x8xf32, #tpu.memory_space<vmem>>, vector<1x8x8xf32>
    %347 = vector.shape_cast %346 : vector<1x8x8xf32> to vector<8x8xf32>
    %cst_171 = arith.constant dense<0.000000e+00> : vector<8x256xf32>
    %348 = tpu.matmul %347, %329, %cst_171 {dimension_numbers = #tpu.dot_dimension_numbers<[1], [0], [0], [1], [0, 0, 1, 1], [], []>} : vector<8x8xf32>, vector<8x256xf32>, vector<8x256xf32> -> vector<8x256xf32>
    %349 = arith.addf %345, %348 : vector<8x256xf32>
    %c4_172 = arith.constant 4 : index
    %c0_173 = arith.constant 0 : index
    %c0_174 = arith.constant 0 : index
    %350 = vector.load %arg5[%c4_172, %c0_173, %c0_174] : memref<9x8x8xf32, #tpu.memory_space<vmem>>, vector<1x8x8xf32>
    %351 = vector.shape_cast %350 : vector<1x8x8xf32> to vector<8x8xf32>
    %cst_175 = arith.constant dense<0.000000e+00> : vector<8x256xf32>
    %352 = tpu.matmul %351, %130, %cst_175 {dimension_numbers = #tpu.dot_dimension_numbers<[1], [0], [0], [1], [0, 0, 1, 1], [], []>} : vector<8x8xf32>, vector<8x256xf32>, vector<8x256xf32> -> vector<8x256xf32>
    %353 = arith.addf %349, %352 : vector<8x256xf32>
    %c5_176 = arith.constant 5 : index
    %c0_177 = arith.constant 0 : index
    %c0_178 = arith.constant 0 : index
    %354 = vector.load %arg5[%c5_176, %c0_177, %c0_178] : memref<9x8x8xf32, #tpu.memory_space<vmem>>, vector<1x8x8xf32>
    %355 = vector.shape_cast %354 : vector<1x8x8xf32> to vector<8x8xf32>
    %cst_179 = arith.constant dense<0.000000e+00> : vector<8x256xf32>
    %356 = tpu.matmul %355, %330, %cst_179 {dimension_numbers = #tpu.dot_dimension_numbers<[1], [0], [0], [1], [0, 0, 1, 1], [], []>} : vector<8x8xf32>, vector<8x256xf32>, vector<8x256xf32> -> vector<8x256xf32>
    %357 = arith.addf %353, %356 : vector<8x256xf32>
    %c6_180 = arith.constant 6 : index
    %c0_181 = arith.constant 0 : index
    %c0_182 = arith.constant 0 : index
    %358 = vector.load %arg5[%c6_180, %c0_181, %c0_182] : memref<9x8x8xf32, #tpu.memory_space<vmem>>, vector<1x8x8xf32>
    %359 = vector.shape_cast %358 : vector<1x8x8xf32> to vector<8x8xf32>
    %cst_183 = arith.constant dense<0.000000e+00> : vector<8x256xf32>
    %360 = tpu.matmul %359, %331, %cst_183 {dimension_numbers = #tpu.dot_dimension_numbers<[1], [0], [0], [1], [0, 0, 1, 1], [], []>} : vector<8x8xf32>, vector<8x256xf32>, vector<8x256xf32> -> vector<8x256xf32>
    %361 = arith.addf %357, %360 : vector<8x256xf32>
    %c7_184 = arith.constant 7 : index
    %c0_185 = arith.constant 0 : index
    %c0_186 = arith.constant 0 : index
    %362 = vector.load %arg5[%c7_184, %c0_185, %c0_186] : memref<9x8x8xf32, #tpu.memory_space<vmem>>, vector<1x8x8xf32>
    %363 = vector.shape_cast %362 : vector<1x8x8xf32> to vector<8x8xf32>
    %cst_187 = arith.constant dense<0.000000e+00> : vector<8x256xf32>
    %364 = tpu.matmul %363, %332, %cst_187 {dimension_numbers = #tpu.dot_dimension_numbers<[1], [0], [0], [1], [0, 0, 1, 1], [], []>} : vector<8x8xf32>, vector<8x256xf32>, vector<8x256xf32> -> vector<8x256xf32>
    %365 = arith.addf %361, %364 : vector<8x256xf32>
    %c8_188 = arith.constant 8 : index
    %c0_189 = arith.constant 0 : index
    %c0_190 = arith.constant 0 : index
    %366 = vector.load %arg5[%c8_188, %c0_189, %c0_190] : memref<9x8x8xf32, #tpu.memory_space<vmem>>, vector<1x8x8xf32>
    %367 = vector.shape_cast %366 : vector<1x8x8xf32> to vector<8x8xf32>
    %cst_191 = arith.constant dense<0.000000e+00> : vector<8x256xf32>
    %368 = tpu.matmul %367, %324, %cst_191 {dimension_numbers = #tpu.dot_dimension_numbers<[1], [0], [0], [1], [0, 0, 1, 1], [], []>} : vector<8x8xf32>, vector<8x256xf32>, vector<8x256xf32> -> vector<8x256xf32>
    %369 = arith.addf %365, %368 : vector<8x256xf32>
    %c0_192 = arith.constant 0 : index
    %c0_193 = arith.constant 0 : index
    %370 = vector.load %arg6[%c0_192, %c0_193] : memref<8x1xf32, #tpu.memory_space<vmem>>, vector<8x1xf32>
    %371 = vector.broadcast %370 : vector<8x1xf32> to vector<8x256xf32>
    %372 = arith.addf %369, %371 : vector<8x256xf32>
    %c0_194 = arith.constant 0 : index
    %c0_195 = arith.constant 0 : index
    %c0_196 = arith.constant 0 : index
    %373 = vector.load %arg7[%c0_194, %c0_195, %c0_196] : memref<1x8x256xf32, #tpu.memory_space<vmem>>, vector<1x8x256xf32>
    %374 = vector.shape_cast %373 : vector<1x8x256xf32> to vector<8x256xf32>
    %375 = vector.shape_cast %372 : vector<8x256xf32> to vector<1x8x256xf32>
    tpu.vector_store %arg7[%c0_194, %c0_195, %c0_196], %375 {strides = array<i32>} : memref<1x8x256xf32, #tpu.memory_space<vmem>>, vector<1x8x256xf32>,
    return
  }
  func.func @transform_0(%arg0: i32, %arg1: i32) -> (i32, i32, i32) {
    %c0_i32 = arith.constant 0 : i32
    %c0_i32_0 = arith.constant 0 : i32
    return %arg0, %c0_i32, %arg1 : i32, i32, i32
  }
  func.func @transform_1(%arg0: i32, %arg1: i32) -> (i32, i32, i32) {
    %c1_i32 = arith.constant 1 : i32
    %0 = arith.addi %arg1, %c1_i32 : i32
    %c0_i32 = arith.constant 0 : i32
    %1 = arith.minsi %0, %c0_i32 : i32
    %c0_i32_0 = arith.constant 0 : i32
    %c0_i32_1 = arith.constant 0 : i32
    return %arg0, %c0_i32_0, %1 : i32, i32, i32
  }
  func.func @transform_2(%arg0: i32, %arg1: i32) -> (i32, i32) {
    %c0_i32 = arith.constant 0 : i32
    %c0_i32_0 = arith.constant 0 : i32
    %c0_i32_1 = arith.constant 0 : i32
    return %c0_i32, %c0_i32_0 : i32, i32
  }
  func.func @transform_3(%arg0: i32, %arg1: i32) -> (i32, i32, i32) {
    %c0_i32 = arith.constant 0 : i32
    %c0_i32_0 = arith.constant 0 : i32
    %c0_i32_1 = arith.constant 0 : i32
    %c0_i32_2 = arith.constant 0 : i32
    return %c0_i32, %c0_i32_0, %c0_i32_1 : i32, i32, i32
  }
  func.func @transform_4(%arg0: i32, %arg1: i32) -> (i32, i32) {
    %c0_i32 = arith.constant 0 : i32
    %c0_i32_0 = arith.constant 0 : i32
    %c0_i32_1 = arith.constant 0 : i32
    return %c0_i32, %c0_i32_0 : i32, i32
  }
  func.func @transform_5(%arg0: i32, %arg1: i32) -> (i32, i32, i32) {
    %c0_i32 = arith.constant 0 : i32
    %c0_i32_0 = arith.constant 0 : i32
    return %arg0, %c0_i32, %arg1 : i32, i32, i32
  }
}

</mosaic_0001>

<bundles_post_ra>
// kernel: tpu_custom_call.1
= control target key start
LH: loop header
LB: loop body
LE: loop exit
PB: predicated region body
PF: predicated region fallthrough
CT: control target
= control target key end

     0   :  { %10 = vsyncpa [#allocation5], 0  ;;  %s4416_s0 = inlined_call_operand.vmem [shape: f32[2,8,256], index: 0, kind: input, shape index: {}]   ;;  %s4417_s1 = inlined_call_operand.vmem [shape: f32[2,8,256], index: 1, kind: input, shape index: {}]   ;;  %s4418_s2 = inlined_call_operand.vmem [shape: f32[8,9], index: 2, kind: input, shape index: {}]   ;;  %s4419_s3 = inlined_call_operand.vmem [shape: f32[9,8,8], index: 3, kind: input, shape index: {}]   ;;  %s4420_s4 = inlined_call_operand.vmem [shape: f32[8,1], index: 4, kind: input, shape index: {}]   ;;  %s4421_s5 = inlined_call_operand.hbm [shape: f32[2,8,256], index: 5, kind: output, shape index: {}]  }
   0x1   :  { %11 = vsyncpa [#allocation4], 0 }
   0x2   :  { %13 = vsyncpa [#allocation4 + $0x1], 0  ;;  %s2924_s18 = smov 0   ;;  %s2926_s19 = smov 0  }
   0x3   :  { %s2928_s20 = smov 0   ;;  %s2930_s21 = smov 0  }
   0x4   :  { %s2932_s22 = smov 0   ;;  %s2934_s23 = smov 0  }
   0x5 LB: > { %s2578_s24 = sadd.s32 4294967295, %s2880_s23   ;;  %s2579_s25 = sadd.s32 4294967294, %s2880_s23   ;;  %s2880_s23 = sphi %s2934_s23, %s19_s23   ;;  %s2876_s22 = sphi %s2932_s22, %s4631_s22   ;;  %s2872_s21 = sphi %s2930_s21, %s4630_s21   ;;  %s2868_s20 = sphi %s2928_s20, %s4629_s20   ;;  %s2864_s19 = sphi %s2926_s19, %s4628_s19   ;;  %s2860_s18 = sphi %s2924_s18, %s4627_s18  }
   0x6   : > { %s31_s26 = sadd.s32 1, %s2876_s22  ;;  %s165_s27 = sadd.s32 1, %s2868_s20 }
   0x7   : > { %p33_p0 = scmp.ge.s32.totalorder %s31_s26, 2  ;;  %p175_p1 = scmp.ne.s32.totalorder %s2868_s20, %s2864_s19 }
   0x8   : > { %p176_p2 = scmp.eq.s32.totalorder %s2578_s24, 1  ;;  %p181_p3 = scmp.ne.s32.totalorder %s2864_s19, %s2860_s18 }
   0x9   : > { %s4633_s26 = smov (%p33_p0, %s31_s26), 0  ;;  %p182_p5 = scmp.eq.s32.totalorder %s2579_s25, 1 }
   0xa   : > { %p2964_p4 = por %p176_p2, %p175_p1  ;;  %s160_s29 = ssub.s32 %s2876_s22, %s4633_s26 }
   0xb   : > { %p2580_p6 = scmp.ge.s32.totalorder %s2880_s23, 1  ;;  %p163_p7 = scmp.eq.s32.totalorder %s160_s29, 0 }
   0xc   : > { %p2971_p8 = por %p182_p5, %p181_p3  ;;  %p189_p9 = scmp.lt.s32.totalorder %s2880_s23, 3 }
   0xd   : > { %s2977_s6 = scalar_select %p163_p7, %s2868_s20, %s165_s27  }
   0xe   : > { %p2979_p10 = pnand %p2580_p6, %p189_p9  ;;  %p2983_p11 = scmp.eq.s32.totalorder %s2578_s24, 0 }
   0xf   : > { %s202_s11 = sshll.u32 %s4418_s2, 4  ;;  %s203_s11 = int_to_ptr.vmem [resolvable:$true] %s202_s11 }
  0x10   : > { %p2708_p12 = pneg %p2979_p10  ;;  %s2783_s12 = scalar_lea.vmem %s203_s11, 128 }
  0x11   : > { %p2784_p0 = scmp.ne.s32.totalorder %s203_s11, %s2783_s12  ;;  %p2791_p5 = scmp.lt.s32.totalorder %s203_s11, %s203_s11 }
  0x12   : > { %p2709_p13 = pnand %p2983_p11, %p2708_p12  ;;  %p2792_p6 = scmp.lt.s32.totalorder %s2783_s12, %s2783_s12 }
  0x14   : > { %p2785_p1 = pneg %p2709_p13  ;;  %p2793_p7 = por %p2792_p6, %p2791_p5 }
  0x16   : > { %p2786_p2 = pnand %p2785_p1, %p2784_p0 }
  0x18   : > { %p2787_p3 = pneg %p2786_p2 }
  0x1a   : > { %p2794_p9 = pnand %p2793_p7, %p2787_p3 }
  0x1c   : > { %2797 = shalt.err (!%p2794_p9)
}
  0x1d   : > { %s2882_s13 = smov [#allocation3]   ;;  %253 = sbr.rel (%p2979_p10) target bundleno = 817 (0x331), region = 40 }
  0x1e   : > { %2711 = dma.vmem_to_smem (!%p2709_p13), %s203_s11, 128, %s2882_s13, [#allocation5]  }
  0x24   : > { %2851 = dma.done.wait (%p2983_p11), [#allocation5], 128  }
  0x25   : > { %2853 = vsyncadd (%p2983_p11), [#allocation5], 4294967168 }
  0x26   : > { %259 = sfence }
  0x27   : > { %p299_p12 = scmp.lt.s32.totalorder %s2872_s21, 1  ;;  %s2597_s14 = sld [smem:[#allocation3 + $0x1]]  ;;  %vm1028_vm0 = vcmask 900096   ;;  %vm384_vm1 = vcmask 1039360   ;;  %vm545_vm2 = vcmask 1031168   ;;  %vm706_vm3 = vcmask 916480  }
  0x28   : > { %s2598_s15 = sld [smem:[#allocation3 + $0x81]]  ;;  %s2883_s10 = smov 127   ;;  %vm867_vm4 = vcmask 908288   ;;  %vm1189_vm5 = vcmask 785408   ;;  %vm1350_vm6 = vcmask 777216   ;;  %vm1511_vm7 = vcmask 769024  }
  0x29   : > { %s300_s16 = scalar_select %p299_p12, %s2872_s21, 1  ;;  %vm1737_vm8 = vcmask 64512  }
  0x2a   : > { %s2599_s8 = sld [smem:[#allocation3 + $0x101]]  ;;  %s2607_s24 = sld [smem:[#allocation3 + $0x102]] }
  0x2b   : > { %s2683_s17 = sshll.u32 %s300_s16, 4  ;;  %s2600_s11 = sld [smem:[#allocation3 + $0x181]] }
  0x2c   : > { %s3005_s27 = scalar_lea.vmem %s4417_s1, %s2683_s17  ;;  %s3010_s9 = scalar_lea.vmem %s4416_s0, %s2683_s17 }
  0x2d   : > { %v3013_v0 = vld [vmem:[%s3005_s27] sm:$0xff]  ;;  %v371_v1 = vstv %s2597_s14  ;;  %v3019_v3 = vld [vmem:[%s3010_s9 + $0x8] sm:$0xff]  ;;  %s2601_s12 = sld [smem:[#allocation3 + $0x201]]  ;;  %s2605_s16 = sld [smem:[#allocation3 + $0x2]] }
  0x2e   : > { %v3016_v2 = vld [vmem:[%s3010_s9] sm:$0xff]  ;;  %v374_v4 = vmul.f32 %v371_v1, %v3013_v0  ;;  %v392_v6 = vstv %s2598_s15  ;;  %v373_v8 = vmul.f32 %v371_v1, %v3019_v3  ;;  %s2602_s13 = sld [smem:[#allocation3 + $0x281]]  ;;  %s2606_s17 = sld [smem:[#allocation3 + $0x82]] }
  0x2f   : > { %v372_v5 = vmul.f32 %v371_v1, %v3016_v2  ;;  %v393_v7 = vmul.f32 %v392_v6, %v3016_v2  ;;  %v395_v9 = vmul.f32 %v392_v6, %v3013_v0  ;;  %v394_v10 = vmul.f32 %v392_v6, %v3019_v3  ;;  %s2603_s14 = sld [smem:[#allocation3 + $0x301]]  ;;  %s2884_s25 = smov 126  }
  0x30   : > { %382 = vrot.lane.b32.xlu1 %v374_v4, %s2883_s10  ;;  %v412_v11 = vstv %s2599_s8  ;;  %s2604_s15 = sld [smem:[#allocation3 + $0x381]]  ;;  %s2608_s29 = sld [smem:[#allocation3 + $0x182]]  ;;  %v573_v43 = vstv %s2607_s24 }
  0x31   : > { %378 = vrot.lane.b32.xlu0 %v372_v5, %s2883_s10  ;;  %v414_v12 = vmul.f32 %v412_v11, %v3019_v3  ;;  %v413_v13 = vmul.f32 %v412_v11, %v3016_v2  ;;  %v432_v14 = vstv %s2600_s11  ;;  %v415_v16 = vmul.f32 %v412_v11, %v3013_v0  ;;  %s2609_s7 = sld [smem:[#allocation3 + $0x202]]  ;;  %s2618_s24 = sld [smem:[#allocation3 + $0x283]] }
  0x32   : > { %v433_v15 = vmul.f32 %v432_v14, %v3016_v2  ;;  %v435_v17 = vmul.f32 %v432_v14, %v3013_v0  ;;  %v434_v18 = vmul.f32 %v432_v14, %v3019_v3  ;;  %v575_v44 = vmul.f32 %v573_v43, %v3019_v3  ;;  %s2610_s8 = sld [smem:[#allocation3 + $0x282]] }
  0x33   : > { %v452_v19 = vstv %s2601_s12  ;;  %v532_v35 = vstv %s2605_s16  ;;  %v574_v45 = vmul.f32 %v573_v43, %v3016_v2  ;;  %v576_v48 = vmul.f32 %v573_v43, %v3013_v0  ;;  %s2612_s11 = sld [smem:[#allocation3 + $0x382]]  ;;  %s2613_s12 = sld [smem:[#allocation3 + $0x3]] }
  0x34   : > { %399 = vrot.lane.b32.xlu1 %v393_v7, %s2883_s10  ;;  %v454_v20 = vmul.f32 %v452_v19, %v3019_v3  ;;  %v453_v21 = vmul.f32 %v452_v19, %v3016_v2  ;;  %v472_v22 = vstv %s2602_s13  ;;  %v455_v24 = vmul.f32 %v452_v19, %v3013_v0  ;;  %s2614_s13 = sld [smem:[#allocation3 + $0x83]]  ;;  %s2885_s16 = smov 112  }
  0x35   : > { %380 = vrot.lane.b32.xlu0 %v373_v8, %s2883_s10  ;;  %v473_v23 = vmul.f32 %v472_v22, %v3016_v2  ;;  %v475_v25 = vmul.f32 %v472_v22, %v3013_v0  ;;  %v474_v26 = vmul.f32 %v472_v22, %v3019_v3  ;;  %v492_v27 = vstv %s2603_s14  ;;  %s2615_s14 = sld [smem:[#allocation3 + $0x103]] }
  0x36   : > { %v494_v28 = vmul.f32 %v492_v27, %v3019_v3  ;;  %v493_v29 = vmul.f32 %v492_v27, %v3016_v2  ;;  %v512_v30 = vstv %s2604_s15  ;;  %v495_v32 = vmul.f32 %v492_v27, %v3013_v0  ;;  %s2616_s15 = sld [smem:[#allocation3 + $0x183]] }
  0x37   : > { %v513_v31 = vmul.f32 %v512_v30, %v3016_v2  ;;  %v515_v33 = vmul.f32 %v512_v30, %v3013_v0  ;;  %v514_v34 = vmul.f32 %v512_v30, %v3019_v3  ;;  %v534_v36 = vmul.f32 %v532_v35, %v3019_v3 }
  0x38   : > { %403 = vrot.lane.b32.xlu1 %v395_v9, %s2883_s10  ;;  %v533_v37 = vmul.f32 %v532_v35, %v3016_v2  ;;  %v553_v38 = vstv %s2606_s17  ;;  %v535_v40 = vmul.f32 %v532_v35, %v3013_v0  ;;  %v593_v46 = vstv %s2608_s29  ;;  %s2617_s17 = sld [smem:[#allocation3 + $0x203]] }
  0x39   : > { %401 = vrot.lane.b32.xlu0 %v394_v10, %s2883_s10  ;;  %v554_v39 = vmul.f32 %v553_v38, %v3016_v2  ;;  %v556_v41 = vmul.f32 %v553_v38, %v3013_v0  ;;  %v555_v42 = vmul.f32 %v553_v38, %v3019_v3  ;;  %v595_v47 = vmul.f32 %v593_v46, %v3019_v3  ;;  %s2620_s29 = sld [smem:[#allocation3 + $0x383]] }
  0x3a   : > { %v613_v49 = vstv %s2609_s7  ;;  %v596_v51 = vmul.f32 %v593_v46, %v3013_v0  ;;  %v633_v52 = vstv %s2610_s8  ;;  %v673_v58 = vstv %s2612_s11  ;;  %s2621_s7 = sld [smem:[#allocation3 + $0x4]] }
  0x3b   : > { %v615_v50 = vmul.f32 %v613_v49, %v3019_v3  ;;  %v635_v53 = vmul.f32 %v633_v52, %v3019_v3  ;;  %v616_v54 = vmul.f32 %v613_v49, %v3013_v0  ;;  %v636_v57 = vmul.f32 %v633_v52, %v3013_v0  ;;  %s2622_s8 = sld [smem:[#allocation3 + $0x84]] }
  0x3c   : > { %421 = vrot.lane.b32.xlu1 %v414_v12, %s2883_s10  ;;  %v675_v59 = vmul.f32 %v673_v58, %v3019_v3  ;;  %v594_v61 = vmul.f32 %v593_v46, %v3016_v2  ;;  %v676_v62 = vmul.f32 %v673_v58, %v3013_v0  ;;  %v634_v63 = vmul.f32 %v633_v52, %v3016_v2  ;;  %s2624_s11 = sld [smem:[#allocation3 + $0x184]] }
  0x3d   : > { %419 = vrot.lane.b32.xlu0 %v413_v13, %s2883_s10  ;;  %v614_v1 = vmul.f32 %v613_v49, %v3016_v2  ;;  %v674_v4 = vmul.f32 %v673_v58, %v3016_v2  ;;  %v693_v6 = vstv %s2613_s12  ;;  %v714_v9 = vstv %s2614_s13  ;;  %s2886_s12 = smov 111   ;;  %s2625_s13 = sld [smem:[#allocation3 + $0x204]] }
  0x3e   : > { %v696_v7 = vmul.f32 %v693_v6, %v3013_v0  ;;  %v695_v8 = vmul.f32 %v693_v6, %v3019_v3  ;;  %v717_v10 = vmul.f32 %v714_v9, %v3013_v0  ;;  %v716_v11 = vmul.f32 %v714_v9, %v3019_v3 }
  0x3f   : > { %v734_v12 = vstv %s2615_s14  ;;  %s2626_s14 = sld [smem:[#allocation3 + $0x284]] }
  0x40   : > { %439 = vrot.lane.b32.xlu1 %v433_v15, %s2883_s10  ;;  %v737_v13 = vmul.f32 %v734_v12, %v3013_v0  ;;  %v736_v14 = vmul.f32 %v734_v12, %v3019_v3  ;;  %v754_v15 = vstv %s2616_s15  ;;  %s2627_s15 = sld [smem:[#allocation3 + $0x304]] }
  0x41   : > { %423 = vrot.lane.b32.xlu0 %v415_v16, %s2883_s10  ;;  %v757_v16 = vmul.f32 %v754_v15, %v3013_v0 }
  0x44   : > { %443 = vrot.lane.b32.xlu1 %v435_v17, %s2883_s10  ;;  %v756_v17 = vmul.f32 %v754_v15, %v3019_v3 }
  0x45   : > { %441 = vrot.lane.b32.xlu0 %v434_v18, %s2883_s10  ;;  %v774_v18 = vstv %s2617_s17  ;;  %s2629_s17 = sld [smem:[#allocation3 + $0x5]] }
  0x46   : > { %v777_v19 = vmul.f32 %v774_v18, %v3013_v0 }
  0x48   : > { %461 = vrot.lane.b32.xlu1 %v454_v20, %s2883_s10  ;;  %v776_v20 = vmul.f32 %v774_v18, %v3019_v3 }
  0x49   : > { %459 = vrot.lane.b32.xlu0 %v453_v21, %s2883_s10  ;;  %v794_v21 = vstv %s2618_s24  ;;  %s2630_s24 = sld [smem:[#allocation3 + $0x85]] }
  0x4a   : > { %v797_v22 = vmul.f32 %v794_v21, %v3013_v0 }
  0x4c   : > { %479 = vrot.lane.b32.xlu1 %v473_v23, %s2883_s10  ;;  %v796_v23 = vmul.f32 %v794_v21, %v3019_v3 }
  0x4d   : > { %463 = vrot.lane.b32.xlu0 %v455_v24, %s2883_s10 }
  0x50   : > { %483 = vrot.lane.b32.xlu1 %v475_v25, %s2883_s10 }
  0x51   : > { %481 = vrot.lane.b32.xlu0 %v474_v26, %s2883_s10 }
  0x54   : > { %501 = vrot.lane.b32.xlu1 %v494_v28, %s2883_s10 }
  0x55   : > { %499 = vrot.lane.b32.xlu0 %v493_v29, %s2883_s10  ;;  %v834_v29 = vstv %s2620_s29  ;;  %s2632_s29 = sld [smem:[#allocation3 + $0x185]] }
  0x58   : > { %519 = vrot.lane.b32.xlu1 %v513_v31, %s2883_s10 }
  0x59   : > { %503 = vrot.lane.b32.xlu0 %v495_v32, %s2883_s10  ;;  %v837_v32 = vmul.f32 %v834_v29, %v3013_v0 }
  0x5c   : > { %523 = vrot.lane.b32.xlu1 %v515_v33, %s2883_s10  ;;  %v836_v33 = vmul.f32 %v834_v29, %v3019_v3 }
  0x5d   : > { %521 = vrot.lane.b32.xlu0 %v514_v34, %s2883_s10  ;;  %s2611_s10 = sld [smem:[#allocation3 + $0x302]] }
  0x60   : > { %541 = vrot.lane.b32.xlu1 %v534_v36, %s2884_s25  ;;  %v715_v36 = vmul.f32 %v714_v9, %v3016_v2  ;;  %v935_v9 = vstv %s2625_s13  ;;  %s2636_s13 = sld [smem:[#allocation3 + $0x385]] }
  0x61   : > { %539 = vrot.lane.b32.xlu0 %v533_v37, %s2884_s25  ;;  %v694_v37 = vmul.f32 %v693_v6, %v3016_v2 }
  0x63   : > { %v653_v55 = vstv %s2611_s10  ;;  %s2623_s10 = sld [smem:[#allocation3 + $0x104]] }
  0x64   : > { %560 = vrot.lane.b32.xlu1 %v554_v39, %s2884_s25  ;;  %v655_v56 = vmul.f32 %v653_v55, %v3019_v3  ;;  %v656_v60 = vmul.f32 %v653_v55, %v3013_v0  ;;  %v654_v5 = vmul.f32 %v653_v55, %v3016_v2  ;;  %v875_v55 = vstv %s2622_s8  ;;  %s2633_s8 = sld [smem:[#allocation3 + $0x205]] }
  0x65   : > { %543 = vrot.lane.b32.xlu0 %v535_v40, %s2884_s25  ;;  %v755_v40 = vmul.f32 %v754_v15, %v3016_v2  ;;  %v878_v58 = vmul.f32 %v875_v55, %v3013_v0 }
  0x68   : > { %564 = vrot.lane.b32.xlu1 %v556_v41, %s2884_s25  ;;  %v735_v41 = vmul.f32 %v734_v12, %v3016_v2  ;;  %v938_v12 = vmul.f32 %v935_v9, %v3013_v0 }
  0x69   : > { %562 = vrot.lane.b32.xlu0 %v555_v42, %s2884_s25 }
  0x6c   : > { %582 = vrot.lane.b32.xlu1 %v575_v44, %s2884_s25  ;;  %v795_v44 = vmul.f32 %v794_v21, %v3016_v2 }
  0x6d   : > { %580 = vrot.lane.b32.xlu0 %v574_v45, %s2884_s25  ;;  %v775_v45 = vmul.f32 %v774_v18, %v3016_v2 }
  0x70   : > { %602 = vrot.lane.b32.xlu1 %v595_v47, %s2884_s25 }
  0x71   : > { %584 = vrot.lane.b32.xlu0 %v576_v48, %s2884_s25  ;;  %v835_v48 = vmul.f32 %v834_v29, %v3016_v2 }
  0x74   : > { %622 = vrot.lane.b32.xlu1 %v615_v50, %s2884_s25  ;;  %v3187_v50 = vstv %s2621_s7  ;;  %s2887_s7 = smov 110  }
  0x75   : > { %604 = vrot.lane.b32.xlu0 %v596_v51, %s2884_s25 }
  0x78   : > { %642 = vrot.lane.b32.xlu1 %v635_v53, %s2884_s25  ;;  %v857_v53 = vmul.f32 %v3187_v50, %v3013_v0 }
  0x79   : > { %624 = vrot.lane.b32.xlu0 %v616_v54, %s2884_s25  ;;  %v856_v54 = vmul.f32 %v3187_v50, %v3019_v3 }
  0x7c   : > { %662 = vrot.lane.b32.xlu1 %v655_v56, %s2884_s25 }
  0x7d   : > { %644 = vrot.lane.b32.xlu0 %v636_v57, %s2884_s25 }
  0x80   : > { %682 = vrot.lane.b32.xlu1 %v675_v59, %s2884_s25  ;;  %v877_v59 = vmul.f32 %v875_v55, %v3019_v3 }
  0x81   : > { %664 = vrot.lane.b32.xlu0 %v656_v60, %s2884_s25  ;;  %v895_v60 = vstv %s2623_s10  ;;  %s2634_s10 = sld [smem:[#allocation3 + $0x285]] }
  0x84   : > { %600 = vrot.lane.b32.xlu1 %v594_v61, %s2884_s25 }
  0x85   : > { %684 = vrot.lane.b32.xlu0 %v676_v62, %s2884_s25 }
  0x88   : > { %640 = vrot.lane.b32.xlu1 %v634_v63, %s2884_s25  ;;  %v898_v63 = vmul.f32 %v895_v60, %v3013_v0 }
  0x89   : > { %620 = vrot.lane.b32.xlu0 %v614_v1, %s2884_s25  ;;  %v897_v1 = vmul.f32 %v895_v60, %v3019_v3 }
  0x8c   : > { %680 = vrot.lane.b32.xlu1 %v674_v4, %s2884_s25  ;;  %v915_v4 = vstv %s2624_s11  ;;  %s2635_s11 = sld [smem:[#allocation3 + $0x305]] }
  0x8d   : > { %660 = vrot.lane.b32.xlu0 %v654_v5, %s2884_s25  ;;  %s2619_s25 = sld [smem:[#allocation3 + $0x303]] }
  0x90   : > { %704 = vrot.lane.b32.xlu1 %v696_v7, %s2885_s16  ;;  %v918_v7 = vmul.f32 %v915_v4, %v3013_v0 }
  0x91   : > { %702 = vrot.lane.b32.xlu0 %v695_v8, %s2885_s16  ;;  %v917_v8 = vmul.f32 %v915_v4, %v3019_v3 }
  0x93   : > { %v814_v24 = vstv %s2619_s25  ;;  %s2631_s25 = sld [smem:[#allocation3 + $0x105]] }
  0x94   : > { %725 = vrot.lane.b32.xlu1 %v717_v10, %s2885_s16  ;;  %v817_v27 = vmul.f32 %v814_v24, %v3013_v0  ;;  %v816_v28 = vmul.f32 %v814_v24, %v3019_v3  ;;  %v815_v49 = vmul.f32 %v814_v24, %v3016_v2 }
  0x95   : > { %723 = vrot.lane.b32.xlu0 %v716_v11, %s2885_s16 }
  0x98   : > { %745 = vrot.lane.b32.xlu1 %v737_v13, %s2885_s16  ;;  %v937_v13 = vmul.f32 %v935_v9, %v3019_v3 }
  0x99   : > { %743 = vrot.lane.b32.xlu0 %v736_v14, %s2885_s16  ;;  %v955_v14 = vstv %s2626_s14  ;;  %s2637_s14 = sld [smem:[#allocation3 + $0x6]] }
  0x9a   : > { %v957_v18 = vmul.f32 %v955_v14, %v3019_v3 }
  0x9c   : > { %765 = vrot.lane.b32.xlu1 %v757_v16, %s2885_s16 }
  0x9d   : > { %763 = vrot.lane.b32.xlu0 %v756_v17, %s2885_s16  ;;  %v958_v17 = vmul.f32 %v955_v14, %v3013_v0 }
  0xa0   : > { %785 = vrot.lane.b32.xlu1 %v777_v19, %s2885_s16  ;;  %v975_v19 = vstv %s2627_s15  ;;  %s2638_s15 = sld [smem:[#allocation3 + $0x86]] }
  0xa1   : > { %783 = vrot.lane.b32.xlu0 %v776_v20, %s2885_s16 }
  0xa2   : > { %v3139_v25 = vpop.permute.xlu1 %382 }
  0xa3   : > { %v3141_v26 = vpop.permute.xlu0 %378 }
  0xa4   : > { %805 = vrot.lane.b32.xlu1 %v797_v22, %s2885_s16  ;;  %v978_v22 = vmul.f32 %v975_v19, %v3013_v0 }
  0xa5   : > { %803 = vrot.lane.b32.xlu0 %v796_v23, %s2885_s16  ;;  %v977_v23 = vmul.f32 %v975_v19, %v3019_v3 }
  0xa6   : > { %v3147_v30 = vpop.permute.xlu1 %399 }
  0xa7   : > { %v3149_v31 = vpop.permute.xlu0 %380 }
  0xa8   : > { %825 = vrot.lane.b32.xlu1 %v817_v27, %s2885_s16 }
  0xa9   : > { %823 = vrot.lane.b32.xlu0 %v816_v28, %s2885_s16 }
  0xaa   : > { %v3155_v34 = vpop.permute.xlu1 %403 }
  0xab   : > { %v3157_v35 = vpop.permute.xlu0 %401 }
  0xac   : > { %845 = vrot.lane.b32.xlu1 %v837_v32, %s2885_s16 }
  0xad   : > { %843 = vrot.lane.b32.xlu0 %v836_v33, %s2885_s16 }
  0xae   : > { %v3163_v38 = vpop.permute.xlu1 %421 }
  0xaf   : > { %v3165_v39 = vpop.permute.xlu0 %419 }
  0xb0   : > { %721 = vrot.lane.b32.xlu1 %v715_v36, %s2885_s16 }
  0xb1   : > { %700 = vrot.lane.b32.xlu0 %v694_v37, %s2885_s16  ;;  %v876_v37 = vmul.f32 %v875_v55, %v3016_v2 }
  0xb2   : > { %v3171_v42 = vpop.permute.xlu1 %439 }
  0xb3   : > { %v3173_v43 = vpop.permute.xlu0 %423 }
  0xb4   : > { %761 = vrot.lane.b32.xlu1 %v755_v40, %s2885_s16  ;;  %v855_v40 = vmul.f32 %v3187_v50, %v3016_v2  ;;  %v956_v50 = vmul.f32 %v955_v14, %v3016_v2 }
  0xb5   : > { %741 = vrot.lane.b32.xlu0 %v735_v41, %s2885_s16 }
  0xb6   : > { %v3179_v46 = vpop.permute.xlu1 %443 }
  0xb7   : > { %v3181_v47 = vpop.permute.xlu0 %441 }
  0xb8   : > { %801 = vrot.lane.b32.xlu1 %v795_v44, %s2885_s16 }
  0xb9   : > { %781 = vrot.lane.b32.xlu0 %v775_v45, %s2885_s16  ;;  %v916_v45 = vmul.f32 %v915_v4, %v3016_v2 }
  0xba   : > { %v3189_v51 = vpop.permute.xlu1 %461 }
  0xbb   : > { %v3191_v52 = vpop.permute.xlu0 %459 }
  0xbc   : > { %841 = vrot.lane.b32.xlu1 %v835_v48, %s2885_s16  ;;  %v896_v48 = vmul.f32 %v895_v60, %v3016_v2  ;;  %v976_v60 = vmul.f32 %v975_v19, %v3016_v2 }
  0xbd   : > { %821 = vrot.lane.b32.xlu0 %v815_v49, %s2885_s16  ;;  %s2628_s16 = sld [smem:[#allocation3 + $0x384]] }
  0xbe   : > { %v3199_v56 = vpop.permute.xlu1 %479 }
  0xbf   : > { %4449 = vst [vmem:[#allocation9_spill] sm:$0xff] %v3199_v56  ;;  %v3201_v57 = vpop.permute.xlu0 %463 }
  0xc0   : > { %865 = vrot.lane.b32.xlu1 %v857_v53, %s2886_s12 }
  0xc1   : > { %863 = vrot.lane.b32.xlu0 %v856_v54, %s2886_s12  ;;  %v936_v54 = vmul.f32 %v935_v9, %v3016_v2  ;;  %v1036_v9 = vstv %s2630_s24  ;;  %s2888_s24 = smov 96  }
  0xc2   : > { %v3207_v61 = vpop.permute.xlu1 %483  ;;  %v1039_v14 = vmul.f32 %v1036_v9, %v3013_v0 }
  0xc3   : > { %v3209_v62 = vpop.permute.xlu0 %481  ;;  %v995_v24 = vstv %s2628_s16  ;;  %s2639_s16 = sld [smem:[#allocation3 + $0x106]] }
  0xc4   : > { %886 = vrot.lane.b32.xlu1 %v878_v58, %s2886_s12  ;;  %v998_v29 = vmul.f32 %v995_v24, %v3013_v0  ;;  %v997_v32 = vmul.f32 %v995_v24, %v3019_v3 }
  0xc5   : > { %884 = vrot.lane.b32.xlu0 %v877_v59, %s2886_s12  ;;  %v996_v59 = vmul.f32 %v995_v24, %v3016_v2 }
  0xc6   : > { %v3215_v5 = vpop.permute.xlu1 %501 }
  0xc7   : > { %4450 = vst [vmem:[#allocation10_spill] sm:$0xff] %v3215_v5  ;;  %v3217_v6 = vpop.permute.xlu0 %499 }
  0xc8   : > { %4451 = vst [vmem:[#allocation11_spill] sm:$0xff] %v3217_v6  ;;  %906 = vrot.lane.b32.xlu1 %v898_v63, %s2886_s12  ;;  %v3288_v63 = vstv %s2629_s17  ;;  %s2640_s17 = sld [smem:[#allocation3 + $0x186]] }
  0xc9   : > { %904 = vrot.lane.b32.xlu0 %v897_v1, %s2886_s12 }
  0xca   : > { %v3223_v10 = vpop.permute.xlu1 %519 }
  0xcb   : > { %4452 = vst [vmem:[#allocation12_spill] sm:$0xff] %v3223_v10  ;;  %v3225_v11 = vpop.permute.xlu0 %503 }
  0xcc   : > { %4453 = vst [vmem:[#allocation13_spill] sm:$0xff] %v3225_v11  ;;  %926 = vrot.lane.b32.xlu1 %v918_v7, %s2886_s12  ;;  %v1018_v7 = vmul.f32 %v3288_v63, %v3013_v0 }
  0xcd   : > { %924 = vrot.lane.b32.xlu0 %v917_v8, %s2886_s12  ;;  %v1017_v8 = vmul.f32 %v3288_v63, %v3019_v3 }
  0xce   : > { %v3231_v15 = vpop.permute.xlu1 %523 }
  0xcf   : > { %4454 = vst [vmem:[#allocation14_spill] sm:$0xff] %v3231_v15  ;;  %v3233_v16 = vpop.permute.xlu0 %521 }
  0xd0   : > { %4455 = vst [vmem:[#allocation15_spill] sm:$0xff] %v3233_v16  ;;  %946 = vrot.lane.b32.xlu1 %v938_v12, %s2886_s12 }
  0xd1   : > { %944 = vrot.lane.b32.xlu0 %v937_v13, %s2886_s12 }
  0xd2   : > { %v3239_v20 = vpop.permute.xlu1 %541 }
  0xd3   : > { %4456 = vst [vmem:[#allocation16_spill] sm:$0xff] %v3239_v20  ;;  %v3241_v21 = vpop.permute.xlu0 %539 }
  0xd4   : > { %4457 = vst [vmem:[#allocation17_spill] sm:$0xff] %v3241_v21  ;;  %966 = vrot.lane.b32.xlu1 %v958_v17, %s2886_s12  ;;  %v1038_v17 = vmul.f32 %v1036_v9, %v3019_v3 }
  0xd5   : > { %964 = vrot.lane.b32.xlu0 %v957_v18, %s2886_s12  ;;  %v1056_v18 = vstv %s2631_s25  ;;  %s2641_s25 = sld [smem:[#allocation3 + $0x206]] }
  0xd6   : > { %v3247_v27 = vpop.permute.xlu1 %560  ;;  %v1058_v24 = vmul.f32 %v1056_v18, %v3019_v3 }
  0xd7   : > { %4458 = vst [vmem:[#allocation18_spill] sm:$0xff] %v3247_v27  ;;  %v3249_v28 = vpop.permute.xlu0 %543  ;;  %v1057_v27 = vmul.f32 %v1056_v18, %v3016_v2 }
  0xd8   : > { %4459 = vst [vmem:[#allocation19_spill] sm:$0xff] %v3249_v28  ;;  %986 = vrot.lane.b32.xlu1 %v978_v22, %s2886_s12  ;;  %v1217_v28 = vstv %s2639_s16  ;;  %s2649_s16 = sld [smem:[#allocation3 + $0x207]] }
  0xd9   : > { %984 = vrot.lane.b32.xlu0 %v977_v23, %s2886_s12  ;;  %v1059_v23 = vmul.f32 %v1056_v18, %v3013_v0 }
  0xda   : > { %v3255_v33 = vpop.permute.xlu1 %564 }
  0xdb   : > { %v3257_v36 = vpop.permute.xlu0 %562 }
  0xdc   : > { %1006 = vrot.lane.b32.xlu1 %v998_v29, %s2886_s12  ;;  %v1076_v29 = vstv %s2632_s29  ;;  %s2642_s29 = sld [smem:[#allocation3 + $0x286]] }
  0xdd   : > { %1004 = vrot.lane.b32.xlu0 %v997_v32, %s2886_s12 }
  0xde   : > { %v3264_v41 = vpop.permute.xlu1 %582 }
  0xdf   : > { %v3266_v44 = vpop.permute.xlu0 %580 }
  0xe0   : > { %4460 = vst [vmem:[#allocation20_spill] sm:$0xff] %v3266_v44  ;;  %882 = vrot.lane.b32.xlu1 %v876_v37, %s2886_s12  ;;  %v1077_v44 = vmul.f32 %v1076_v29, %v3016_v2 }
  0xe1   : > { %861 = vrot.lane.b32.xlu0 %v855_v40, %s2886_s12  ;;  %v1079_v40 = vmul.f32 %v1076_v29, %v3013_v0 }
  0xe2   : > { %v3272_v49 = vpop.permute.xlu1 %602 }
  0xe3   : > { %v3274_v53 = vpop.permute.xlu0 %584 }
  0xe4   : > { %922 = vrot.lane.b32.xlu1 %v916_v45, %s2886_s12  ;;  %v1078_v45 = vmul.f32 %v1076_v29, %v3019_v3 }
  0xe5   : > { %902 = vrot.lane.b32.xlu0 %v896_v48, %s2886_s12  ;;  %v1096_v48 = vstv %s2633_s8  ;;  %s2644_s8 = sld [smem:[#allocation3 + $0x386]] }
  0xe6   : > { %v3280_v55 = vpop.permute.xlu1 %622 }
  0xe7   : > { %4461 = vst [vmem:[#allocation21_spill] sm:$0xff] %v3280_v55  ;;  %v3282_v58 = vpop.permute.xlu0 %604 }
  0xe8   : > { %962 = vrot.lane.b32.xlu1 %v956_v50, %s2886_s12 }
  0xe9   : > { %942 = vrot.lane.b32.xlu0 %v936_v54, %s2886_s12 }
  0xea   : > { %v3290_v1 = vpop.permute.xlu1 %642 }
  0xeb   : > { %4462 = vst [vmem:[#allocation22_spill] sm:$0xff] %v3290_v1  ;;  %v3292_v4 = vpop.permute.xlu0 %624 }
  0xec   : > { %1002 = vrot.lane.b32.xlu1 %v996_v59, %s2886_s12  ;;  %v1099_v59 = vmul.f32 %v1096_v48, %v3013_v0 }
  0xed   : > { %982 = vrot.lane.b32.xlu0 %v976_v60, %s2886_s12  ;;  %v1098_v60 = vmul.f32 %v1096_v48, %v3019_v3 }
  0xee   : > { %v3300_v12 = vpop.permute.xlu1 %662 }
  0xef   : > { %4463 = vst [vmem:[#allocation23_spill] sm:$0xff] %v3300_v12  ;;  %v3302_v13 = vpop.permute.xlu0 %644 }
  0xf0   : > { %4464 = vst [vmem:[#allocation24_spill] sm:$0xff] %v3302_v13  ;;  %1026 = vrot.lane.b32.xlu1 %v1018_v7, %s2887_s7  ;;  %v1116_v7 = vstv %s2634_s10  ;;  %s2645_s10 = sld [smem:[#allocation3 + $0x7]] }
  0xf1   : > { %1024 = vrot.lane.b32.xlu0 %v1017_v8, %s2887_s7 }
  0xf2   : > { %v3308_v19 = vpop.permute.xlu1 %682 }
  0xf3   : > { %4465 = vst [vmem:[#allocation25_spill] sm:$0xff] %v3308_v19  ;;  %v3310_v22 = vpop.permute.xlu0 %664 }
  0xf4   : > { %4466 = vst [vmem:[#allocation26_spill] sm:$0xff] %v3310_v22  ;;  %1047 = vrot.lane.b32.xlu1 %v1039_v14, %s2887_s7  ;;  %v1218_v22 = vmul.f32 %v1217_v28, %v3016_v2 }
  0xf5   : > { %1045 = vrot.lane.b32.xlu0 %v1038_v17, %s2887_s7  ;;  %v1119_v17 = vmul.f32 %v1116_v7, %v3013_v0 }
  0xf6   : > { %v3316_v32 = vpop.permute.xlu1 %600 }
  0xf7   : > { %4467 = vst [vmem:[#allocation27_spill] sm:$0xff] %v3316_v32  ;;  %v3318_v37 = vpop.permute.xlu0 %684  ;;  %v1016_v32 = vmul.f32 %v3288_v63, %v3016_v2  ;;  %v1117_v63 = vmul.f32 %v1116_v7, %v3016_v2 }
  0xf8   : > { %4468 = vst [vmem:[#allocation28_spill] sm:$0xff] %v3318_v37  ;;  %1067 = vrot.lane.b32.xlu1 %v1059_v23, %s2887_s7  ;;  %v1118_v23 = vmul.f32 %v1116_v7, %v3019_v3 }
  0xf9   : > { %1065 = vrot.lane.b32.xlu0 %v1058_v24, %s2887_s7  ;;  %v1136_v24 = vstv %s2635_s11  ;;  %s2646_s11 = sld [smem:[#allocation3 + $0x87]] }
  0xfa   : > { %v3324_v50 = vpop.permute.xlu1 %640  ;;  %v1137_v29 = vmul.f32 %v1136_v24, %v3016_v2 }
  0xfb   : > { %4469 = vst [vmem:[#allocation29_spill] sm:$0xff] %v3324_v50  ;;  %v3326_v54 = vpop.permute.xlu0 %620  ;;  %v1037_v50 = vmul.f32 %v1036_v9, %v3016_v2  ;;  %v1097_v9 = vmul.f32 %v1096_v48, %v3016_v2 }
  0xfc   : > { %4470 = vst [vmem:[#allocation30_spill] sm:$0xff] %v3326_v54  ;;  %1087 = vrot.lane.b32.xlu1 %v1079_v40, %s2887_s7 }
  0xfd   : > { %1085 = vrot.lane.b32.xlu0 %v1078_v45, %s2887_s7 }
  0xfe   : > { %v3332_v8 = vpop.permute.xlu1 %680 }
  0xff   : > { %4471 = vst [vmem:[#allocation31_spill] sm:$0xff] %v3332_v8  ;;  %v3334_v14 = vpop.permute.xlu0 %660  ;;  %v1139_v8 = vmul.f32 %v1136_v24, %v3013_v0 }
 0x100   : > { %4472 = vst [vmem:[#allocation32_spill] sm:$0xff] %v3334_v14  ;;  %1107 = vrot.lane.b32.xlu1 %v1099_v59, %s2887_s7  ;;  %v1138_v14 = vmul.f32 %v1136_v24, %v3019_v3  ;;  %v1156_v59 = vstv %s2636_s13  ;;  %s2647_s13 = sld [smem:[#allocation3 + $0x107]] }
 0x101   : > { %1105 = vrot.lane.b32.xlu0 %v1098_v60, %s2887_s7  ;;  %v1157_v18 = vmul.f32 %v1156_v59, %v3016_v2 }
 0x102   : > { %v3340_v40 = vpop.permute.xlu1 %704 }
 0x103   : > { %4473 = vst [vmem:[#allocation33_spill] sm:$0xff] %v3340_v40  ;;  %v3342_v45 = vpop.permute.xlu0 %702  ;;  %v1159_v40 = vmul.f32 %v1156_v59, %v3013_v0 }
 0x104   : > { %4474 = vst [vmem:[#allocation34_spill] sm:$0xff] %v3342_v45  ;;  %1127 = vrot.lane.b32.xlu1 %v1119_v17, %s2887_s7  ;;  %v1158_v45 = vmul.f32 %v1156_v59, %v3019_v3  ;;  %v1197_v59 = vstv %s2638_s15  ;;  %s2889_s15 = smov 95  }
 0x105   : > { %1125 = vrot.lane.b32.xlu0 %v1118_v23, %s2887_s7 }
 0x106   : > { %v3348_v54 = vpop.permute.xlu1 %725 }
 0x107   : > { %v3350_v60 = vpop.permute.xlu0 %723 }
 0x108   : > { %1147 = vrot.lane.b32.xlu1 %v1139_v8, %s2887_s7 }
 0x109   : > { %1145 = vrot.lane.b32.xlu0 %v1138_v14, %s2887_s7 }
 0x10a   : > { %v3356_v17 = vpop.permute.xlu1 %745 }
 0x10b   : > { %v3358_v23 = vpop.permute.xlu0 %743 }
 0x10c   : > { %1167 = vrot.lane.b32.xlu1 %v1159_v40, %s2887_s7 }
 0x10d   : > { %1165 = vrot.lane.b32.xlu0 %v1158_v45, %s2887_s7 }
 0x10e   : > { %v3365_v8 = vpop.permute.xlu1 %765 }
 0x10f   : > { %4475 = vst [vmem:[#allocation35_spill] sm:$0xff] %v3365_v8  ;;  %v3367_v14 = vpop.permute.xlu0 %763 }
 0x110   : > { %4476 = vst [vmem:[#allocation36_spill] sm:$0xff] %v3367_v14  ;;  %1043 = vrot.lane.b32.xlu1 %v1037_v50, %s2887_s7 }
 0x111   : > { %1022 = vrot.lane.b32.xlu0 %v1016_v32, %s2887_s7 }
 0x112   : > { %v3373_v40 = vpop.permute.xlu1 %785 }
 0x113   : > { %4477 = vst [vmem:[#allocation37_spill] sm:$0xff] %v3373_v40  ;;  %v3375_v45 = vpop.permute.xlu0 %783 }
 0x114   : > { %4478 = vst [vmem:[#allocation38_spill] sm:$0xff] %v3375_v45  ;;  %1083 = vrot.lane.b32.xlu1 %v1077_v44, %s2887_s7  ;;  %v3389_v44 = vstv %s2637_s14  ;;  %s2648_s14 = sld [smem:[#allocation3 + $0x187]] }
 0x115   : > { %1063 = vrot.lane.b32.xlu0 %v1057_v27, %s2887_s7  ;;  %v1179_v48 = vmul.f32 %v3389_v44, %v3013_v0 }
 0x116   : > { %v3381_v50 = vpop.permute.xlu1 %805 }
 0x117   : > { %4479 = vst [vmem:[#allocation39_spill] sm:$0xff] %v3381_v50  ;;  %v3383_v32 = vpop.permute.xlu0 %803  ;;  %v1177_v50 = vmul.f32 %v3389_v44, %v3016_v2 }
 0x118   : > { %4480 = vst [vmem:[#allocation40_spill] sm:$0xff] %v3383_v32  ;;  %1123 = vrot.lane.b32.xlu1 %v1117_v63, %s2887_s7  ;;  %v1178_v63 = vmul.f32 %v3389_v44, %v3019_v3  ;;  %v1198_v32 = vmul.f32 %v1197_v59, %v3016_v2 }
 0x119   : > { %1103 = vrot.lane.b32.xlu0 %v1097_v9, %s2887_s7 }
 0x11a   : > { %v3391_v27 = vpop.permute.xlu1 %825 }
 0x11b   : > { %4481 = vst [vmem:[#allocation41_spill] sm:$0xff] %v3391_v27  ;;  %v3393_v7 = vpop.permute.xlu0 %823 }
 0x11c   : > { %4482 = vst [vmem:[#allocation42_spill] sm:$0xff] %v3393_v7  ;;  %1163 = vrot.lane.b32.xlu1 %v1157_v18, %s2887_s7  ;;  %v1200_v18 = vmul.f32 %v1197_v59, %v3013_v0 }
 0x11d   : > { %1143 = vrot.lane.b32.xlu0 %v1137_v29, %s2887_s7  ;;  %v1199_v29 = vmul.f32 %v1197_v59, %v3019_v3  ;;  %s2643_s7 = sld [smem:[#allocation3 + $0x306]] }
 0x11e   : > { %v3401_v24 = vpop.permute.xlu1 %845 }
 0x11f   : > { %4483 = vst [vmem:[#allocation43_spill] sm:$0xff] %v3401_v24  ;;  %v3403_v9 = vpop.permute.xlu0 %843  ;;  %v1237_v24 = vstv %s2640_s17  ;;  %s2650_s17 = sld [smem:[#allocation3 + $0x287]] }
 0x120   : > { %4484 = vst [vmem:[#allocation44_spill] sm:$0xff] %v3403_v9  ;;  %1187 = vrot.lane.b32.xlu1 %v1179_v48, %s2888_s24  ;;  %v1220_v9 = vmul.f32 %v1217_v28, %v3013_v0  ;;  %v1219_v48 = vmul.f32 %v1217_v28, %v3019_v3  ;;  %v1238_v12 = vmul.f32 %v1237_v24, %v3016_v2 }
 0x121   : > { %1185 = vrot.lane.b32.xlu0 %v1178_v63, %s2888_s24 }
 0x122   : > { %v3409_v7 = vpop.permute.xlu1 %721 }
 0x123   : > { %4485 = vst [vmem:[#allocation45_spill] sm:$0xff] %v3409_v7  ;;  %v3411_v27 = vpop.permute.xlu0 %700  ;;  %v1257_v7 = vstv %s2641_s25  ;;  %s2652_s25 = sld [smem:[#allocation3 + $0x387]] }
 0x124   : > { %4486 = vst [vmem:[#allocation46_spill] sm:$0xff] %v3411_v27  ;;  %1208 = vrot.lane.b32.xlu1 %v1200_v18, %s2888_s24  ;;  %v1240_v27 = vmul.f32 %v1237_v24, %v3013_v0  ;;  %v1239_v18 = vmul.f32 %v1237_v24, %v3019_v3  ;;  %v1258_v59 = vmul.f32 %v1257_v7, %v3016_v2 }
 0x125   : > { %1206 = vrot.lane.b32.xlu0 %v1199_v29, %s2888_s24 }
 0x126   : > { %v3417_v63 = vpop.permute.xlu1 %761 }
 0x127   : > { %4487 = vst [vmem:[#allocation47_spill] sm:$0xff] %v3417_v63  ;;  %v3419_v19 = vpop.permute.xlu0 %741  ;;  %v1277_v63 = vstv %s2642_s29  ;;  %s3612_s29 = sld [smem:[#allocation3]] }
 0x128   : > { %4488 = vst [vmem:[#allocation48_spill] sm:$0xff] %v3419_v19  ;;  %1228 = vrot.lane.b32.xlu1 %v1220_v9, %s2888_s24  ;;  %v1260_v19 = vmul.f32 %v1257_v7, %v3013_v0  ;;  %v1259_v9 = vmul.f32 %v1257_v7, %v3019_v3  ;;  %v1278_v44 = vmul.f32 %v1277_v63, %v3016_v2 }
 0x129   : > { %1226 = vrot.lane.b32.xlu0 %v1219_v48, %s2888_s24 }
 0x12a   : > { %v3425_v29 = vpop.permute.xlu1 %801 }
 0x12b   : > { %4489 = vst [vmem:[#allocation49_spill] sm:$0xff] %v3425_v29  ;;  %v3427_v37 = vpop.permute.xlu0 %781  ;;  %v1297_v29 = vstv %s2643_s7  ;;  %s3618_s7 = sld [smem:[#allocation3 + $0x80]] }
 0x12c   : > { %4490 = vst [vmem:[#allocation50_spill] sm:$0xff] %v3427_v37  ;;  %1248 = vrot.lane.b32.xlu1 %v1240_v27, %s2888_s24  ;;  %v1280_v37 = vmul.f32 %v1277_v63, %v3013_v0  ;;  %v1279_v27 = vmul.f32 %v1277_v63, %v3019_v3  ;;  %v1298_v24 = vmul.f32 %v1297_v29, %v3016_v2 }
 0x12d   : > { %1246 = vrot.lane.b32.xlu0 %v1239_v18, %s2888_s24 }
 0x12e   : > { %v3433_v48 = vpop.permute.xlu1 %841 }
 0x12f   : > { %4491 = vst [vmem:[#allocation51_spill] sm:$0xff] %v3433_v48  ;;  %v3435_v21 = vpop.permute.xlu0 %821  ;;  %v1300_v48 = vmul.f32 %v1297_v29, %v3013_v0 }
 0x130   : > { %4492 = vst [vmem:[#allocation52_spill] sm:$0xff] %v3435_v21  ;;  %1268 = vrot.lane.b32.xlu1 %v1260_v19, %s2888_s24  ;;  %v1299_v21 = vmul.f32 %v1297_v29, %v3019_v3  ;;  %v1317_v19 = vstv %s2644_s8  ;;  %s3624_s8 = sld [smem:[#allocation3 + $0x100]] }
 0x131   : > { %1266 = vrot.lane.b32.xlu0 %v1259_v9, %s2888_s24  ;;  %v1318_v28 = vmul.f32 %v1317_v19, %v3016_v2 }
 0x132   : > { %v3441_v18 = vpop.permute.xlu1 %865 }
 0x133   : > { %4493 = vst [vmem:[#allocation53_spill] sm:$0xff] %v3441_v18  ;;  %v3443_v20 = vpop.permute.xlu0 %863  ;;  %v1320_v18 = vmul.f32 %v1317_v19, %v3013_v0 }
 0x134   : > { %4494 = vst [vmem:[#allocation54_spill] sm:$0xff] %v3443_v20  ;;  %1288 = vrot.lane.b32.xlu1 %v1280_v37, %s2888_s24  ;;  %v1319_v20 = vmul.f32 %v1317_v19, %v3019_v3  ;;  %v3502_v19 = vstv %s2646_s11  ;;  %s3628_s11 = sld [smem:[#allocation3 + $0x180]] }
 0x135   : > { %1286 = vrot.lane.b32.xlu0 %v1279_v27, %s2888_s24 }
 0x136   : > { %v3449_v15 = vpop.permute.xlu1 %886 }
 0x137   : > { %v3451_v9 = vpop.permute.xlu0 %884 }
 0x138   : > { %1308 = vrot.lane.b32.xlu1 %v1300_v48, %s2888_s24 }
 0x139   : > { %1306 = vrot.lane.b32.xlu0 %v1299_v21, %s2888_s24 }
 0x13a   : > { %v3457_v37 = vpop.permute.xlu1 %906 }
 0x13b   : > { %v3459_v27 = vpop.permute.xlu0 %904 }
 0x13c   : > { %1328 = vrot.lane.b32.xlu1 %v1320_v18, %s2888_s24 }
 0x13d   : > { %1326 = vrot.lane.b32.xlu0 %v1319_v20, %s2888_s24 }
 0x13e   : > { %v3466_v48 = vpop.permute.xlu1 %926 }
 0x13f   : > { %4495 = vst [vmem:[#allocation55_spill] sm:$0xff] %v3466_v48  ;;  %v3468_v21 = vpop.permute.xlu0 %924 }
 0x140   : > { %4496 = vst [vmem:[#allocation56_spill] sm:$0xff] %v3468_v21  ;;  %1204 = vrot.lane.b32.xlu1 %v1198_v32, %s2888_s24 }
 0x141   : > { %1183 = vrot.lane.b32.xlu0 %v1177_v50, %s2888_s24 }
 0x142   : > { %v3474_v18 = vpop.permute.xlu1 %946 }
 0x143   : > { %4497 = vst [vmem:[#allocation57_spill] sm:$0xff] %v3474_v18  ;;  %v3476_v20 = vpop.permute.xlu0 %944 }
 0x144   : > { %4498 = vst [vmem:[#allocation58_spill] sm:$0xff] %v3476_v20  ;;  %1244 = vrot.lane.b32.xlu1 %v1238_v12, %s2888_s24  ;;  %v3490_v12 = vstv %s2645_s10  ;;  %s2655_s10 = sld [smem:[#allocation3 + $0x108]] }
 0x145   : > { %1224 = vrot.lane.b32.xlu0 %v1218_v22, %s2888_s24  ;;  %v1340_v7 = vmul.f32 %v3490_v12, %v3013_v0 }
 0x146   : > { %v3482_v32 = vpop.permute.xlu1 %966 }
 0x147   : > { %4499 = vst [vmem:[#allocation59_spill] sm:$0xff] %v3482_v32  ;;  %v3484_v50 = vpop.permute.xlu0 %964 }
 0x148   : > { %4500 = vst [vmem:[#allocation60_spill] sm:$0xff] %v3484_v50  ;;  %1284 = vrot.lane.b32.xlu1 %v1278_v44, %s2888_s24  ;;  %v1339_v44 = vmul.f32 %v3490_v12, %v3019_v3 }
 0x149   : > { %1264 = vrot.lane.b32.xlu0 %v1258_v59, %s2888_s24  ;;  %v1361_v59 = vmul.f32 %v3502_v19, %v3013_v0 }
 0x14a   : > { %v3492_v22 = vpop.permute.xlu1 %986 }
 0x14b   : > { %4501 = vst [vmem:[#allocation61_spill] sm:$0xff] %v3492_v22  ;;  %v3494_v63 = vpop.permute.xlu0 %984 }
 0x14c   : > { %4502 = vst [vmem:[#allocation62_spill] sm:$0xff] %v3494_v63  ;;  %1324 = vrot.lane.b32.xlu1 %v1318_v28, %s2888_s24  ;;  %v1360_v28 = vmul.f32 %v3502_v19, %v3019_v3 }
 0x14d   : > { %1304 = vrot.lane.b32.xlu0 %v1298_v24, %s2888_s24  ;;  %v3514_v24 = vstv %s2647_s13  ;;  %s2651_s24 = sld [smem:[#allocation3 + $0x307]]  ;;  %s3632_s13 = sld [smem:[#allocation3 + $0x200]] }
 0x14e   : > { %v3504_v2 = vpop.permute.xlu1 %1006 }
 0x14f   : > { %4503 = vst [vmem:[#allocation63_spill] sm:$0xff] %v3504_v2  ;;  %v3506_v29 = vpop.permute.xlu0 %1004 }
 0x150   : > { %4504 = vst [vmem:[#allocation64_spill] sm:$0xff] %v3506_v29  ;;  %1348 = vrot.lane.b32.xlu1 %v1340_v7, %s2889_s15  ;;  %v1381_v7 = vmul.f32 %v3514_v24, %v3013_v0  ;;  %v1398_v29 = vstv %s2648_s14  ;;  %s3638_s14 = sld [smem:[#allocation3 + $0x280]] }
 0x151   : > { %1346 = vrot.lane.b32.xlu0 %v1339_v44, %s2889_s15  ;;  %v1380_v44 = vmul.f32 %v3514_v24, %v3019_v3 }
 0x152   : > { %v3516_v63 = vpop.permute.xlu1 %882 }
 0x153   : > { %4505 = vst [vmem:[#allocation65_spill] sm:$0xff] %v3516_v63  ;;  %v3518_v22 = vpop.permute.xlu0 %861 }
 0x154   : > { %4506 = vst [vmem:[#allocation66_spill] sm:$0xff] %v3518_v22  ;;  %1369 = vrot.lane.b32.xlu1 %v1361_v59, %s2889_s15  ;;  %v1401_v59 = vmul.f32 %v1398_v29, %v3013_v0  ;;  %v1418_v22 = vstv %s2649_s16  ;;  %v1438_v0 = vstv %s2650_s17  ;;  %s3648_s16 = sld [smem:[#allocation3 + $0x188]] }
 0x155   : > { %1367 = vrot.lane.b32.xlu0 %v1360_v28, %s2889_s15  ;;  %v1400_v28 = vmul.f32 %v1398_v29, %v3019_v3  ;;  %s3650_s17 = sld [smem:[#allocation3 + $0x300]] }
 0x156   : > { %v3526_v2 = vpop.permute.xlu1 %922 }
 0x157   : > { %4507 = vst [vmem:[#allocation67_spill] sm:$0xff] %v3526_v2  ;;  %v3528_v50 = vpop.permute.xlu0 %902 }
 0x158   : > { %4508 = vst [vmem:[#allocation68_spill] sm:$0xff] %v3528_v50  ;;  %1389 = vrot.lane.b32.xlu1 %v1381_v7, %s2889_s15  ;;  %v3541_v50 = vld [vmem:[%s3005_s27] sm:$0xff]  ;;  %s2653_s27 = sld [smem:[#allocation3 + $0x8]] }
 0x159   : > { %1387 = vrot.lane.b32.xlu0 %v1380_v44, %s2889_s15  ;;  %v1421_v7 = vmul.f32 %v3541_v50, %v1418_v22  ;;  %v1420_v44 = vmul.f32 %v1418_v22, %v3019_v3 }
 0x15a   : > { %v3534_v63 = vpop.permute.xlu1 %962 }
 0x15b   : > { %4509 = vst [vmem:[#allocation69_spill] sm:$0xff] %v3534_v63  ;;  %v3536_v32 = vpop.permute.xlu0 %942  ;;  %v1458_v63 = vstv %s2651_s24  ;;  %s3652_s24 = sld [smem:[#allocation3 + $0x380]] }
 0x15c   : > { %4510 = vst [vmem:[#allocation70_spill] sm:$0xff] %v3536_v32  ;;  %1409 = vrot.lane.b32.xlu1 %v1401_v59, %s2889_s15  ;;  %v1441_v59 = vmul.f32 %v3541_v50, %v1438_v0  ;;  %v3553_v32 = vld [vmem:[%s3010_s9 + $0x8] sm:$0xff] }
 0x15d   : > { %1407 = vrot.lane.b32.xlu0 %v1400_v28, %s2889_s15  ;;  %v1440_v28 = vmul.f32 %v3553_v32, %v1438_v0 }
 0x15e   : > { %v3545_v2 = vpop.permute.xlu1 %1002 }
 0x15f   : > { %4511 = vst [vmem:[#allocation71_spill] sm:$0xff] %v3545_v2  ;;  %v3547_v10 = vpop.permute.xlu0 %982 }
 0x160   : > { %4512 = vst [vmem:[#allocation72_spill] sm:$0xff] %v3547_v10  ;;  %1429 = vrot.lane.b32.xlu1 %v1421_v7, %s2889_s15  ;;  %v1461_v10 = vmul.f32 %v3541_v50, %v1458_v63  ;;  %v1460_v7 = vmul.f32 %v3553_v32, %v1458_v63 }
 0x161   : > { %1427 = vrot.lane.b32.xlu0 %v1420_v44, %s2889_s15  ;;  %v1478_v44 = vstv %s2652_s25  ;;  %s3671_s25 = sld [smem:[#allocation3 + $0x208]] }
 0x162   : > { %v3556_v16 = vpop.permute.xlu1 %1026 }
 0x163   : > { %4513 = vst [vmem:[#allocation73_spill] sm:$0xff] %v3556_v16  ;;  %v3558_v3 = vpop.permute.xlu0 %1024 }
 0x164   : > { %4514 = vst [vmem:[#allocation74_spill] sm:$0xff] %v3558_v3  ;;  %1449 = vrot.lane.b32.xlu1 %v1441_v59, %s2889_s15  ;;  %v1481_v59 = vmul.f32 %v3541_v50, %v1478_v44 }
 0x165   : > { %1447 = vrot.lane.b32.xlu0 %v1440_v28, %s2889_s15  ;;  %v1480_v28 = vmul.f32 %v3553_v32, %v1478_v44 }
 0x166   : > { %v1048_v2 = vpop.permute.xlu1 %1047 }
 0x167   : > { %v3564_v20 = vpop.permute.xlu0 %1045 }
 0x168   : > { %v3568_v18 = vsel %vm1028_vm0, %v3564_v20, %v1048_v2  ;;  %1469 = vrot.lane.b32.xlu1 %v1461_v10, %s2889_s15  ;;  %v3583_v2 = vld [vmem:[%s3010_s9] sm:$0xff]  ;;  %s2654_s9 = sld [smem:[#allocation3 + $0x88]] }
 0x169   : > { %1467 = vrot.lane.b32.xlu0 %v1460_v7, %s2889_s15  ;;  %v1359_v10 = vmul.f32 %v3583_v2, %v3502_v19  ;;  %v1338_v7 = vmul.f32 %v3583_v2, %v3490_v12 }
 0x16a   : > { %v1068_v16 = vpop.permute.xlu1 %1067 }
 0x16b   : > { %v3574_v3 = vpop.permute.xlu0 %1065 }
 0x16c   : > { %v3578_v6 = vsel %vm1028_vm0, %v3574_v3, %v1068_v16  ;;  %1489 = vrot.lane.b32.xlu1 %v1481_v59, %s2889_s15  ;;  %v1399_v16 = vmul.f32 %v3583_v2, %v1398_v29  ;;  %v1379_v59 = vmul.f32 %v3583_v2, %v3514_v24 }
 0x16d   : > { %4515 = vst [vmem:[#allocation75_spill] sm:$0xff] %v3578_v6  ;;  %1487 = vrot.lane.b32.xlu0 %v1480_v28, %s2889_s15 }
 0x16e   : > { %v1088_v45 = vpop.permute.xlu1 %1087 }
 0x16f   : > { %v3589_v40 = vpop.permute.xlu0 %1085 }
 0x170   : > { %v3593_v1 = vsel %vm1028_vm0, %v3589_v40, %v1088_v45  ;;  %1365 = vrot.lane.b32.xlu1 %v1359_v10, %s2889_s15  ;;  %v1439_v45 = vmul.f32 %v3583_v2, %v1438_v0  ;;  %v1419_v10 = vmul.f32 %v3583_v2, %v1418_v22  ;;  %v1479_v0 = vmul.f32 %v3583_v2, %v1478_v44 }
 0x171   : > { %4516 = vst [vmem:[#allocation76_spill] sm:$0xff] %v3593_v1  ;;  %1344 = vrot.lane.b32.xlu0 %v1338_v7, %s2889_s15  ;;  %v1459_v22 = vmul.f32 %v3583_v2, %v1458_v63  ;;  %v344_v1 = vstv %s3624_s8 }
 0x172   : > { %v1108_v19 = vpop.permute.xlu1 %1107  ;;  %v3686_v21 = vmul.f32 %v3583_v2, %v344_v1  ;;  %v3696_v48 = vmul.f32 %v3553_v32, %v344_v1  ;;  %v364_v1 = vstv %s3652_s24 }
 0x173   : > { %v3600_v28 = vpop.permute.xlu0 %1105 }
 0x174   : > { %v3604_v12 = vsel %vm1028_vm0, %v3600_v28, %v1108_v19  ;;  %1405 = vrot.lane.b32.xlu1 %v1399_v16, %s2889_s15  ;;  %v3626_v16 = vstv %s2653_s27  ;;  %s3707_s27 = sld [smem:[#allocation3 + $0x288]] }
 0x175   : > { %4517 = vst [vmem:[#allocation77_spill] sm:$0xff] %v3604_v12  ;;  %1385 = vrot.lane.b32.xlu0 %v1379_v59, %s2889_s15  ;;  %4519 = vst [vmem:[#allocation79_spill] sm:$0xff] %v3626_v16  ;;  %v1501_v63 = vmul.f32 %v3541_v50, %v3626_v16  ;;  %v1500_v44 = vmul.f32 %v3553_v32, %v3626_v16  ;;  %v3669_v16 = vstv %s2655_s10 }
 0x176   : > { %v1128_v29 = vpop.permute.xlu1 %1127  ;;  %4523 = vst [vmem:[#allocation83_spill] sm:$0xff] %v3669_v16 }
 0x177   : > { %v3610_v7 = vpop.permute.xlu0 %1125 }
 0x178   : > { %v3616_v24 = vsel %vm1028_vm0, %v3610_v7, %v1128_v29  ;;  %1445 = vrot.lane.b32.xlu1 %v1439_v45, %s2889_s15 }
 0x179   : > { %4518 = vst [vmem:[#allocation78_spill] sm:$0xff] %v3616_v24  ;;  %1425 = vrot.lane.b32.xlu0 %v1419_v10, %s2889_s15  ;;  %v3646_v10 = vstv %s2654_s9  ;;  %s3752_s9 = sld [smem:[#allocation3 + $0x308]] }
 0x17a   : > { %v1148_v59 = vpop.permute.xlu1 %1147  ;;  %4521 = vst [vmem:[#allocation81_spill] sm:$0xff] %v3646_v10  ;;  %v1522_v24 = vmul.f32 %v3541_v50, %v3646_v10  ;;  %v1521_v12 = vmul.f32 %v3553_v32, %v3646_v10  ;;  %v352_v10 = vstv %s3632_s13  ;;  %s295_s13 = sand.u32 1, %s2864_s19  }
 0x17b   : > { %v3630_v19 = vpop.permute.xlu0 %1145 }
 0x17c   : > { %v3636_v45 = vsel %vm1028_vm0, %v3630_v19, %v1148_v59  ;;  %1485 = vrot.lane.b32.xlu1 %v1479_v0, %s2889_s15 }
 0x17d   : > { %4520 = vst [vmem:[#allocation80_spill] sm:$0xff] %v3636_v45  ;;  %1465 = vrot.lane.b32.xlu0 %v1459_v22, %s2889_s15  ;;  %v336_v22 = vstv %s3612_s29  ;;  %v340_v45 = vstv %s3618_s7  ;;  %s2890_s15 = smov 94   ;;  %s3785_s29 = sld [smem:[#allocation3 + $0x388]] }
 0x17e   : > { %v1168_v29 = vpop.permute.xlu1 %1167  ;;  %v342_v6 = vmul.f32 %v3553_v32, %v340_v45  ;;  %v341_v5 = vmul.f32 %v3583_v2, %v340_v45  ;;  %v1541_v45 = vmul.f32 %v3553_v32, %v3669_v16 }
 0x17f   : > { %v3654_v0 = vpop.permute.xlu0 %1165 }
 0x180   : > { %v3659_v59 = vsel %vm1028_vm0, %v3654_v0, %v1168_v29  ;;  %1509 = vrot.lane.b32.xlu1 %v1501_v63, %s2890_s15  ;;  %v338_v29 = vmul.f32 %v3553_v32, %v336_v22  ;;  %v348_v63 = vstv %s3628_s11 }
 0x181   : > { %4522 = vst [vmem:[#allocation82_spill] sm:$0xff] %v3659_v59  ;;  %1507 = vrot.lane.b32.xlu0 %v1500_v44, %s2890_s15  ;;  %v337_v59 = vmul.f32 %v3583_v2, %v336_v22  ;;  %v356_v22 = vstv %s3638_s14  ;;  %s2585_s14 = sshll.u32 %s295_s13, 4 }
 0x182   : > { %v1044_v44 = vpop.permute.xlu1 %1043  ;;  %v3718_v8 = vmul.f32 %v3553_v32, %v356_v22 }
 0x183   : > { %v3676_v13 = vpop.permute.xlu0 %1022  ;;  %v3683_v11 = vsel %vm1028_vm0, %v1044_v44, %v3564_v20  ;;  %v3699_v20 = vmul.f32 %v3553_v32, %v348_v63  ;;  %v3702_v44 = vmul.f32 %v3583_v2, %v348_v63  ;;  %v3721_v63 = vmul.f32 %v3583_v2, %v356_v22 }
 0x184   : > { %4524 = vst [vmem:[#allocation84_spill] sm:$0xff] %v3676_v13  ;;  %4525 = vst [vmem:[#allocation85_spill] sm:$0xff] %v3683_v11  ;;  %1530 = vrot.lane.b32.xlu1 %v1522_v24, %s2890_s15  ;;  %v1542_v13 = vmul.f32 %v3541_v50, %v3669_v16  ;;  %v3705_v11 = vstv %s3648_s16  ;;  %v3713_v24 = vmul.f32 %v3553_v32, %v352_v10  ;;  %v360_v16 = vstv %s3650_s17  ;;  %s2685_s16 = sshll.u32 %s2872_s21, 8  ;;  %s297_s17 = scalar_lea.vmem [#allocation6], %s2585_s14 }
 0x185   : > { %1528 = vrot.lane.b32.xlu0 %v1521_v12, %s2890_s15  ;;  %v3710_v12 = vmul.f32 %v3583_v2, %v352_v10  ;;  %4527 = vst [vmem:[#allocation87_spill] sm:$0xff] %v3721_v63  ;;  %v385_v10 = vsel %vm384_vm1, %v3141_v26, %v3149_v31  ;;  %v1562_v22 = vmul.f32 %v3541_v50, %v3705_v11  ;;  %v3750_v26 = vstv %s3671_s25  ;;  %s2472_s24 = sshll.u32 %s297_s17, 4  ;;  %s2893_s21 = smov [#allocation6]   ;;  %s4371_s24 = int_to_ptr.vmem [resolvable:$true] %s2472_s24 }
 0x186   : > { %v1084_v56 = vpop.permute.xlu1 %1083  ;;  %v1561_v63 = vmul.f32 %v3553_v32, %v3705_v11 }
 0x187   : > { %4526 = vst [vmem:[#allocation86_spill] sm:$0xff] %v3710_v12  ;;  %v1064_v14 = vpop.permute.xlu0 %1063  ;;  %v3725_v55 = vsel %vm1028_vm0, %v1084_v56, %v3589_v40  ;;  %v3741_v56 = vmul.f32 %v3583_v2, %v360_v16  ;;  %v3747_v40 = vmul.f32 %v3553_v32, %v364_v1 }
 0x188   : > { %4528 = vst [vmem:[#allocation88_spill] sm:$0xff] %v3725_v55  ;;  %v3729_v12 = vsel %vm1028_vm0, %v1064_v14, %v3574_v3  ;;  %1550 = vrot.lane.b32.xlu1 %v1542_v13, %s2890_s15  ;;  %v3744_v14 = vmul.f32 %v3553_v32, %v360_v16  ;;  %v386_v13 = vsel %vm384_vm1, %v3149_v31, %v3139_v25 }
 0x189   : > { %4529 = vst [vmem:[#allocation89_spill] sm:$0xff] %v3729_v12  ;;  %1548 = vrot.lane.b32.xlu0 %v1541_v45, %s2890_s15  ;;  %4530 = vst [vmem:[#allocation90_spill] sm:$0xff] %v3747_v40  ;;  %v405_v3 = vsel %vm384_vm1, %v3147_v30, %v3157_v35  ;;  %v406_v16 = vsel %vm384_vm1, %v3157_v35, %v3155_v34  ;;  %v3764_v45 = vmul.f32 %v3583_v2, %v364_v1 }
 0x18a   : > { %v1124_v12 = vpop.permute.xlu1 %1123  ;;  %v3766_v40 = vadd.f32 %v385_v10, %v337_v59  ;;  %v567_v31 = vsel %vm545_vm2, %v3257_v36, %v3255_v33  ;;  %v1582_v34 = vmul.f32 %v3541_v50, %v3750_v26  ;;  %v1581_v35 = vmul.f32 %v3553_v32, %v3750_v26 }
 0x18b   : > { %v1104_v55 = vpop.permute.xlu0 %1103  ;;  %v3770_v25 = vsel %vm1028_vm0, %v1124_v12, %v3610_v7  ;;  %v3787_v7 = vadd.f32 %v386_v13, %v338_v29  ;;  %v3792_v59 = vstv %s3707_s27  ;;  %v425_v33 = vsel %vm384_vm1, %v3165_v39, %v3163_v38  ;;  %s4369_s27 = scalar_lea.hbm %s4421_s5, %s2685_s16 }
 0x18c   : > { %v3774_v30 = vsel %vm1028_vm0, %v1104_v55, %v3600_v28  ;;  %1570 = vrot.lane.b32.xlu1 %v1562_v22, %s2890_s15  ;;  %v3789_v55 = vadd.f32 %v405_v3, %v341_v5  ;;  %v410_v28 = vadd.f32 %v406_v16, %v342_v6  ;;  %v426_v12 = vsel %vm384_vm1, %v3163_v38, %v3173_v43 }
 0x18d   : > { %1568 = vrot.lane.b32.xlu0 %v1561_v63, %s2890_s15  ;;  %v446_v1 = vsel %vm384_vm1, %v3181_v47, %v3179_v46  ;;  %v728_v6 = vsel %vm706_vm3, %v3350_v60, %v3348_v54  ;;  %v587_v43 = vsel %vm545_vm2, %v3264_v41, %v3274_v53  ;;  %v1602_v46 = vmul.f32 %v3541_v50, %v3792_v59 }
 0x18e   : > { %v1164_v29 = vpop.permute.xlu1 %1163  ;;  %v571_v63 = vadd.f32 %v567_v31, %v410_v28  ;;  %v1601_v54 = vmul.f32 %v3553_v32, %v3792_v59  ;;  %v889_v53 = vsel %vm867_vm4, %v3451_v9, %v3449_v15  ;;  %v3831_v10 = vstv %s3752_s9  ;;  %s2456_s9 = scalar_lea.sflag [#allocation4], %s295_s13 }
 0x18f   : > { %v1144_v5 = vpop.permute.xlu0 %1143  ;;  %v3808_v39 = vsel %vm1028_vm0, %v1164_v29, %v3654_v0  ;;  %v3824_v0 = vadd.f32 %v425_v33, %v3686_v21  ;;  %v445_v22 = vsel %vm384_vm1, %v3171_v42, %v3181_v47  ;;  %v450_v13 = vadd.f32 %v446_v1, %v3699_v20 }
 0x190   : > { %4531 = vst [vmem:[#allocation91_spill] sm:$0xff] %v3808_v39  ;;  %v3812_v38 = vsel %vm1028_vm0, %v1144_v5, %v3630_v19  ;;  %1590 = vrot.lane.b32.xlu1 %v1582_v34, %s2890_s15  ;;  %v430_v19 = vadd.f32 %v426_v12, %v3696_v48  ;;  %v466_v21 = vsel %vm384_vm1, %v3189_v51, %v3201_v57 }
 0x191   : > { %4532 = vst [vmem:[#allocation92_spill] sm:$0xff] %v3812_v38  ;;  %1588 = vrot.lane.b32.xlu0 %v1581_v35, %s2890_s15  ;;  %v732_v3 = vadd.f32 %v728_v6, %v571_v63  ;;  %v607_v15 = vsel %vm545_vm2, %v3272_v49, %v3282_v58  ;;  %v748_v34 = vsel %vm706_vm3, %v3358_v23, %v3356_v17  ;;  %v3859_v58 = vstv %s3785_s29  ;;  %v4534_v6 = vld [vmem:[#allocation21_spill] sm:$0xff]  ;;  %s2798_s29 = scalar_lea.vmem %s4371_s24, 256 }
 0x192   : > { %v1188_v16 = vpop.permute.xlu1 %1187  ;;  %v591_v31 = vadd.f32 %v587_v43, %v430_v19  ;;  %v1622_v57 = vmul.f32 %v3541_v50, %v3831_v10  ;;  %v1621_v20 = vmul.f32 %v3553_v32, %v3831_v10  ;;  %v3862_v35 = vadd.f32 %v445_v22, %v3702_v44  ;;  %p2799_p10 = scmp.ne.s32.totalorder %s4371_s24, %s2798_s29 }
 0x193   : > { %v3840_v48 = vpop.permute.xlu0 %1185  ;;  %v893_v47 = vadd.f32 %v889_v53, %v732_v3  ;;  %v465_v17 = vsel %vm384_vm1, %v3191_v52, %v3189_v51  ;;  %v470_v28 = vadd.f32 %v466_v21, %v3713_v24  ;;  %v909_v33 = vsel %vm867_vm4, %v3459_v27, %v3457_v37  ;;  %v4535_v52 = vld [vmem:[#allocation35_spill] sm:$0xff]  ;;  %v4536_v24 = vld [vmem:[#allocation36_spill] sm:$0xff]  ;;  %v4539_v53 = vld [vmem:[#allocation9_spill] sm:$0xff] }
 0x194   : > { %v3850_v42 = vsel %vm1189_vm5, %v3840_v48, %v1188_v16  ;;  %1610 = vrot.lane.b32.xlu1 %v1602_v46, %s2890_s15  ;;  %v486_v12 = vsel %vm384_vm1, %v3209_v62, %v3207_v61  ;;  %v611_v1 = vadd.f32 %v607_v15, %v450_v13  ;;  %v752_v29 = vadd.f32 %v748_v34, %v591_v31  ;;  %v4540_v21 = vld [vmem:[#allocation55_spill] sm:$0xff]  ;;  %v4541_v3 = vld [vmem:[#allocation56_spill] sm:$0xff]  ;;  %v4542_v31 = vld [vmem:[#allocation13_spill] sm:$0xff]  ;;  %p2800_p11 = pnand %p2799_p10, %p2964_p4 }
 0x195   : > { %4533 = vst [vmem:[#allocation93_spill] sm:$0xff] %v3850_v42  ;;  %1608 = vrot.lane.b32.xlu0 %v1601_v54, %s2890_s15  ;;  %v1054_v5 = vadd.f32 %v3568_v18, %v893_v47  ;;  %v627_v51 = vsel %vm545_vm2, %v4534_v6, %v3292_v4  ;;  %v768_v43 = vsel %vm706_vm3, %v4536_v24, %v4535_v52  ;;  %v4538_v18 = vld [vmem:[#allocation86_spill] sm:$0xff]  ;;  %v4571_v42 = vld [vmem:[#allocation28_spill] sm:$0xff] }
 0x196   : > { %v1209_v44 = vpop.permute.xlu1 %1208  ;;  %v1642_v61 = vmul.f32 %v3541_v50, %v3859_v58  ;;  %v913_v46 = vadd.f32 %v909_v33, %v752_v29  ;;  %v1641_v4 = vmul.f32 %v3553_v32, %v3859_v58  ;;  %v3894_v19 = vadd.f32 %v465_v17, %v4538_v18  ;;  %v4543_v15 = vld [vmem:[#allocation10_spill] sm:$0xff]  ;;  %v4549_v18 = vld [vmem:[#allocation81_spill] sm:$0xff]  ;;  %p2801_p13 = pneg %p2800_p11 }
 0x197   : > { %v3875_v63 = vpop.permute.xlu0 %1206  ;;  %v485_v22 = vsel %vm384_vm1, %v4539_v53, %v3209_v62  ;;  %v490_v13 = vadd.f32 %v486_v12, %v3718_v8  ;;  %v929_v16 = vsel %vm867_vm4, %v4541_v3, %v4540_v21  ;;  %v506_v34 = vsel %vm384_vm1, %v4543_v15, %v4542_v31  ;;  %v4547_v8 = vld [vmem:[#allocation37_spill] sm:$0xff]  ;;  %v4548_v12 = vld [vmem:[#allocation38_spill] sm:$0xff]  ;;  %v4552_v53 = vld [vmem:[#allocation87_spill] sm:$0xff] }
 0x198   : > { %v1211_v37 = vsel %vm1189_vm5, %v3875_v63, %v1209_v44  ;;  %1630 = vrot.lane.b32.xlu1 %v1622_v57, %s2890_s15  ;;  %v631_v47 = vadd.f32 %v627_v51, %v470_v28  ;;  %v772_v57 = vadd.f32 %v768_v43, %v611_v1  ;;  %v4546_v44 = vld [vmem:[#allocation22_spill] sm:$0xff]  ;;  %v788_v52 = vsel %vm706_vm3, %v4548_v12, %v4547_v8  ;;  %v4551_v43 = vld [vmem:[#allocation79_spill] sm:$0xff] }
 0x199   : > { %v3887_v54 = vadd.f32 %v1211_v37, %v1054_v5  ;;  %1628 = vrot.lane.b32.xlu0 %v1621_v20, %s2890_s15  ;;  %v4544_v20 = vld [vmem:[#allocation75_spill] sm:$0xff]  ;;  %v4545_v5 = vld [vmem:[#allocation24_spill] sm:$0xff]  ;;  %v1520_v28 = vmul.f32 %v3583_v2, %v4549_v18  ;;  %v3926_v21 = vadd.f32 %v485_v22, %v4552_v53 }
 0x19a   : > { %v1074_v33 = vadd.f32 %v4544_v20, %v913_v46  ;;  %v1229_v17 = vpop.permute.xlu1 %1228  ;;  %v647_v62 = vsel %vm545_vm2, %v4546_v44, %v4545_v5  ;;  %v933_v1 = vadd.f32 %v929_v16, %v772_v57  ;;  %v1499_v46 = vmul.f32 %v3583_v2, %v4551_v43  ;;  %v4553_v31 = vld [vmem:[#allocation11_spill] sm:$0xff]  ;;  %v4554_v5 = vld [vmem:[#allocation57_spill] sm:$0xff]  ;;  %v4555_v16 = vld [vmem:[#allocation58_spill] sm:$0xff] }
 0x19b   : > { %4537 = vst [vmem:[#allocation21_spill] sm:$0xff] %v3887_v54  ;;  %v3907_v29 = vpop.permute.xlu0 %1226  ;;  %v505_v20 = vsel %vm384_vm1, %v4553_v31, %v4543_v15  ;;  %v949_v57 = vsel %vm867_vm4, %v4555_v16, %v4554_v5  ;;  %v651_v8 = vadd.f32 %v647_v62, %v490_v13  ;;  %v4558_v18 = vld [vmem:[#allocation76_spill] sm:$0xff]  ;;  %v4560_v54 = vld [vmem:[#allocation23_spill] sm:$0xff]  ;;  %v1560_v13 = vmul.f32 %v3583_v2, %v3705_v11 }
 0x19c   : > { %v1231_v37 = vsel %vm1189_vm5, %v3907_v29, %v1229_v17  ;;  %1650 = vrot.lane.b32.xlu1 %v1642_v61, %s2890_s15  ;;  %v510_v17 = vadd.f32 %v506_v34, %v3744_v14  ;;  %v4557_v61 = vld [vmem:[#allocation12_spill] sm:$0xff]  ;;  %v1094_v43 = vadd.f32 %v4558_v18, %v933_v1  ;;  %v4561_v14 = vld [vmem:[#allocation39_spill] sm:$0xff] }
 0x19d   : > { %v3919_v51 = vadd.f32 %v1231_v37, %v1074_v33  ;;  %1648 = vrot.lane.b32.xlu0 %v1641_v4, %s2890_s15  ;;  %v4556_v33 = vld [vmem:[#allocation15_spill] sm:$0xff]  ;;  %v792_v37 = vadd.f32 %v788_v52, %v631_v47  ;;  %v4562_v34 = vld [vmem:[#allocation40_spill] sm:$0xff] }
 0x19e   : > { %v525_v4 = vsel %vm384_vm1, %v4557_v61, %v4556_v33  ;;  %v1249_v22 = vpop.permute.xlu1 %1248  ;;  %v808_v31 = vsel %vm706_vm3, %v4562_v34, %v4561_v14  ;;  %v4564_v52 = vld [vmem:[#allocation83_spill] sm:$0xff]  ;;  %v4565_v61 = vld [vmem:[#allocation14_spill] sm:$0xff] }
 0x19f   : > { %4550 = vst [vmem:[#allocation35_spill] sm:$0xff] %v3919_v51  ;;  %v3939_v53 = vpop.permute.xlu0 %1246  ;;  %v4559_v51 = vld [vmem:[#allocation26_spill] sm:$0xff]  ;;  %v953_v47 = vadd.f32 %v949_v57, %v792_v37  ;;  %v1540_v1 = vmul.f32 %v3583_v2, %v4564_v52  ;;  %v526_v18 = vsel %vm384_vm1, %v4556_v33, %v4565_v61  ;;  %v4566_v11 = vld [vmem:[#allocation59_spill] sm:$0xff]  ;;  %v4567_v57 = vld [vmem:[#allocation60_spill] sm:$0xff] }
 0x1a0   : > { %v667_v15 = vsel %vm545_vm2, %v4560_v54, %v4559_v51  ;;  %v1251_v5 = vsel %vm1189_vm5, %v3939_v53, %v1249_v22  ;;  %1526 = vrot.lane.b32.xlu1 %v1520_v28, %s2890_s15  ;;  %v3958_v51 = vadd.f32 %v505_v20, %v3741_v56  ;;  %v3964_v22 = vadd.f32 %v525_v4, %v3764_v45  ;;  %v4568_v28 = vld [vmem:[#allocation16_spill] sm:$0xff]  ;;  %v4570_v52 = vld [vmem:[#allocation77_spill] sm:$0xff]  ;;  %v4574_v61 = vld [vmem:[#allocation42_spill] sm:$0xff] }
 0x1a1   : > { %v3951_v62 = vadd.f32 %v1251_v5, %v1094_v43  ;;  %1505 = vrot.lane.b32.xlu0 %v1499_v46, %s2890_s15  ;;  %v969_v37 = vsel %vm867_vm4, %v4567_v57, %v4566_v11  ;;  %v4569_v43 = vld [vmem:[#allocation17_spill] sm:$0xff]  ;;  %v671_v14 = vadd.f32 %v667_v15, %v510_v17  ;;  %v812_v5 = vadd.f32 %v808_v31, %v651_v8  ;;  %v4576_v31 = vld [vmem:[#allocation90_spill] sm:$0xff] }
 0x1a2   : > { %v546_v46 = vsel %vm545_vm2, %v4569_v43, %v4568_v28  ;;  %v1114_v56 = vadd.f32 %v4570_v52, %v953_v47  ;;  %v1269_v20 = vpop.permute.xlu1 %1268  ;;  %v4572_v33 = vld [vmem:[#allocation25_spill] sm:$0xff]  ;;  %v1600_v17 = vmul.f32 %v3583_v2, %v3792_v59  ;;  %v530_v47 = vadd.f32 %v526_v18, %v4576_v31  ;;  %v4577_v52 = vld [vmem:[#allocation19_spill] sm:$0xff] }
 0x1a3   : > { %4563 = vst [vmem:[#allocation36_spill] sm:$0xff] %v3951_v62  ;;  %v3973_v62 = vpop.permute.xlu0 %1266  ;;  %v687_v45 = vsel %vm545_vm2, %v4572_v33, %v4571_v42  ;;  %v4573_v4 = vld [vmem:[#allocation41_spill] sm:$0xff]  ;;  %v973_v8 = vadd.f32 %v969_v37, %v812_v5  ;;  %v1580_v42 = vmul.f32 %v3583_v2, %v3750_v26  ;;  %v550_v43 = vadd.f32 %v546_v46, %v3766_v40  ;;  %v4579_v37 = vld [vmem:[#allocation62_spill] sm:$0xff]  ;;  %v4583_v31 = vld [vmem:[#allocation43_spill] sm:$0xff] }
 0x1a4   : > { %v828_v38 = vsel %vm706_vm3, %v4574_v61, %v4573_v4  ;;  %v1271_v11 = vsel %vm1189_vm5, %v3973_v62, %v1269_v20  ;;  %1566 = vrot.lane.b32.xlu1 %v1560_v13, %s2890_s15  ;;  %v3996_v20 = vsel %vm545_vm2, %v4568_v28, %v4577_v52  ;;  %v4578_v59 = vld [vmem:[#allocation61_spill] sm:$0xff]  ;;  %v4580_v13 = vld [vmem:[#allocation18_spill] sm:$0xff]  ;;  %v691_v28 = vadd.f32 %v687_v45, %v530_v47  ;;  %v4584_v52 = vld [vmem:[#allocation44_spill] sm:$0xff] }
 0x1a5   : > { %v3985_v15 = vadd.f32 %v1271_v11, %v1114_v56  ;;  %1546 = vrot.lane.b32.xlu0 %v1540_v1, %s2890_s15  ;;  %v989_v5 = vsel %vm867_vm4, %v4579_v37, %v4578_v59  ;;  %v566_v1 = vsel %vm545_vm2, %v4580_v13, %v3257_v36  ;;  %v4581_v56 = vld [vmem:[#allocation20_spill] sm:$0xff]  ;;  %v832_v18 = vadd.f32 %v828_v38, %v671_v14  ;;  %v4582_v4 = vld [vmem:[#allocation78_spill] sm:$0xff]  ;;  %v4585_v14 = vld [vmem:[#allocation27_spill] sm:$0xff] }
 0x1a6   : > { %v586_v26 = vsel %vm545_vm2, %v4581_v56, %v3264_v41  ;;  %v1134_v40 = vadd.f32 %v4582_v4, %v973_v8  ;;  %v1289_v46 = vpop.permute.xlu1 %1288  ;;  %v1640_v36 = vmul.f32 %v3583_v2, %v3859_v58  ;;  %v1620_v41 = vmul.f32 %v3583_v2, %v3831_v10  ;;  %v4586_v8 = vld [vmem:[#allocation63_spill] sm:$0xff]  ;;  %v4587_v47 = vld [vmem:[#allocation64_spill] sm:$0xff]  ;;  %v4589_v10 = vld [vmem:[#allocation30_spill] sm:$0xff] }
 0x1a7   : > { %4575 = vst [vmem:[#allocation86_spill] sm:$0xff] %v3985_v15  ;;  %v4008_v11 = vpop.permute.xlu0 %1286  ;;  %v848_v15 = vsel %vm706_vm3, %v4584_v52, %v4583_v31  ;;  %v993_v13 = vadd.f32 %v989_v5, %v832_v18  ;;  %v570_v38 = vadd.f32 %v566_v1, %v3789_v55  ;;  %v606_v45 = vsel %vm545_vm2, %v4585_v14, %v3272_v49  ;;  %v4590_v56 = vld [vmem:[#allocation80_spill] sm:$0xff]  ;;  %v4593_v14 = vld [vmem:[#allocation46_spill] sm:$0xff] }
 0x1a8   : > { %v1291_v59 = vsel %vm1189_vm5, %v4008_v11, %v1289_v46  ;;  %1606 = vrot.lane.b32.xlu1 %v1600_v17, %s2890_s15  ;;  %v1009_v58 = vsel %vm867_vm4, %v4587_v47, %v4586_v8  ;;  %v2891_v5 = vmov 0.0   ;;  %v4588_v17 = vld [vmem:[#allocation29_spill] sm:$0xff]  ;;  %v626_v55 = vsel %vm545_vm2, %v4589_v10, %v4534_v6  ;;  %v4596_v10 = vld [vmem:[#allocation66_spill] sm:$0xff] }
 0x1a9   : > { %v4017_v39 = vadd.f32 %v1291_v59, %v1134_v40  ;;  %1586 = vrot.lane.b32.xlu0 %v1580_v42, %s2890_s15  ;;  %2124 = vmatprep.mubr.f32.mxu0 %v2891_v5  ;;  %v646_v42 = vsel %vm545_vm2, %v4588_v17, %v4546_v44  ;;  %v852_v1 = vadd.f32 %v848_v15, %v691_v28  ;;  %v4591_v46 = vld [vmem:[#allocation45_spill] sm:$0xff]  ;;  %v4592_v59 = vld [vmem:[#allocation34_spill] sm:$0xff] }
 0x1aa   : > { %1805 = vmatprep.mubr.f32.mxu1 %v2891_v5  ;;  %v1154_v49 = vadd.f32 %v4590_v56, %v993_v13  ;;  %v1309_v18 = vpop.permute.xlu1 %1308  ;;  %v590_v40 = vadd.f32 %v586_v26, %v3824_v0  ;;  %v727_v31 = vsel %vm706_vm3, %v4591_v46, %v3350_v60  ;;  %v707_v44 = vsel %vm706_vm3, %v4593_v14, %v4592_v59  ;;  %v4594_v26 = vld [vmem:[#allocation65_spill] sm:$0xff]  ;;  %v4595_v17 = vld [vmem:[#allocation54_spill] sm:$0xff]  ;;  %v4602_v46 = vld [vmem:[#allocation84_spill] sm:$0xff] }
 0x1ab   : > { %v4039_v4 = vpop.permute.xlu0 %1306  ;;  %v610_v6 = vadd.f32 %v606_v45, %v3862_v35  ;;  %v1013_v15 = vadd.f32 %v1009_v58, %v852_v1  ;;  %v650_v0 = vadd.f32 %v646_v42, %v3926_v21  ;;  %v630_v60 = vadd.f32 %v626_v55, %v3894_v19  ;;  %v4597_v35 = vld [vmem:[#allocation31_spill] sm:$0xff]  ;;  %v4598_v1 = vld [vmem:[#allocation82_spill] sm:$0xff] }
 0x1ac   : > { %v1311_v8 = vsel %vm1189_vm5, %v4039_v4, %v1309_v18  ;;  %1646 = vrot.lane.b32.xlu1 %v1640_v36, %s2890_s15  ;;  %v888_v13 = vsel %vm867_vm4, %v4594_v26, %v3451_v9  ;;  %v868_v56 = vsel %vm867_vm4, %v4596_v10, %v4595_v17  ;;  %v686_v45 = vsel %vm545_vm2, %v4597_v35, %v4572_v33  ;;  %v4599_v19 = vld [vmem:[#allocation47_spill] sm:$0xff]  ;;  %v4600_v9 = vld [vmem:[#allocation48_spill] sm:$0xff]  ;;  %v4601_v18 = vld [vmem:[#allocation74_spill] sm:$0xff] }
 0x1ad   : > { %v4051_v28 = vadd.f32 %v1311_v8, %v1154_v49  ;;  %1626 = vrot.lane.b32.xlu0 %v1620_v41, %s2890_s15  ;;  %v731_v58 = vadd.f32 %v727_v31, %v570_v38  ;;  %v711_v36 = vadd.f32 %v707_v44, %v550_v43  ;;  %v1174_v41 = vadd.f32 %v4598_v1, %v1013_v15  ;;  %v4604_v8 = vld [vmem:[#allocation67_spill] sm:$0xff]  ;;  %v4605_v26 = vld [vmem:[#allocation68_spill] sm:$0xff] }
 0x1ae   : > { %v1329_v49 = vpop.permute.xlu1 %1328  ;;  %v767_v42 = vsel %vm706_vm3, %v4599_v19, %v4536_v24  ;;  %v747_v55 = vsel %vm706_vm3, %v4600_v9, %v3358_v23  ;;  %v1029_v14 = vsel %vm1028_vm0, %v4602_v46, %v4601_v18  ;;  %v690_v24 = vadd.f32 %v686_v45, %v3964_v22  ;;  %v4603_v23 = vld [vmem:[#allocation32_spill] sm:$0xff]  ;;  %v4607_v22 = vld [vmem:[#allocation49_spill] sm:$0xff] }
 0x1af   : > { %v4067_v21 = vpop.permute.xlu0 %1326  ;;  %v892_v43 = vadd.f32 %v888_v13, %v731_v58  ;;  %v872_v38 = vadd.f32 %v868_v56, %v711_v36  ;;  %v666_v44 = vsel %vm545_vm2, %v4603_v23, %v4560_v54  ;;  %v928_v15 = vsel %vm867_vm4, %v4604_v8, %v4541_v3  ;;  %v4608_v54 = vld [vmem:[#allocation50_spill] sm:$0xff]  ;;  %v4609_v19 = vld [vmem:[#allocation33_spill] sm:$0xff]  ;;  %v4614_v23 = vld [vmem:[#allocation51_spill] sm:$0xff] }
 0x1b0   : > { %v1331_v33 = vsel %vm1189_vm5, %v4067_v21, %v1329_v49  ;;  %2051 = vrot.lane.b32.xlu1 %v3541_v50, %s2886_s12  ;;  %v908_v13 = vsel %vm867_vm4, %v4605_v26, %v3459_v27  ;;  %v771_v10 = vadd.f32 %v767_v42, %v610_v6  ;;  %v751_v56 = vadd.f32 %v747_v55, %v590_v40 }
 0x1b1   : > { %v4080_v31 = vadd.f32 %v1331_v33, %v1174_v41  ;;  %2049 = vrot.lane.b32.xlu0 %v3553_v32, %s2886_s12  ;;  %v4606_v32 = vld [vmem:[#allocation85_spill] sm:$0xff]  ;;  %v1033_v58 = vadd.f32 %v1029_v14, %v872_v38  ;;  %v807_v45 = vsel %vm706_vm3, %v4607_v22, %v4562_v34  ;;  %v787_v1 = vsel %vm706_vm3, %v4608_v54, %v4548_v12  ;;  %v4612_v14 = vld [vmem:[#allocation88_spill] sm:$0xff] }
 0x1b2   : > { %v1053_v35 = vadd.f32 %v4606_v32, %v892_v43  ;;  %v1205_v50 = vpop.permute.xlu1 %1204  ;;  %v932_v40 = vadd.f32 %v928_v15, %v771_v10  ;;  %v912_v6 = vadd.f32 %v908_v13, %v751_v56  ;;  %v670_v34 = vadd.f32 %v666_v44, %v3958_v51  ;;  %v4613_v43 = vld [vmem:[#allocation89_spill] sm:$0xff]  ;;  %v4615_v44 = vld [vmem:[#allocation52_spill] sm:$0xff] }
 0x1b3   : > { %v1184_v36 = vpop.permute.xlu0 %1183  ;;  %v1210_v3 = vsel %vm1189_vm5, %v1205_v50, %v3875_v63  ;;  %v708_v12 = vsel %vm706_vm3, %v4592_v59, %v4609_v19  ;;  %v4610_v63 = vld [vmem:[#allocation69_spill] sm:$0xff]  ;;  %v811_v55 = vadd.f32 %v807_v45, %v650_v0  ;;  %v791_v46 = vadd.f32 %v787_v1, %v630_v60 }
 0x1b4   : > { %v1190_v27 = vsel %vm1189_vm5, %v1184_v36, %v3840_v48  ;;  %v4107_v41 = vadd.f32 %v1210_v3, %v1053_v35  ;;  %v968_v42 = vsel %vm867_vm4, %v4610_v63, %v4567_v57  ;;  %v4611_v48 = vld [vmem:[#allocation70_spill] sm:$0xff]  ;;  %v1093_v33 = vadd.f32 %v4612_v14, %v932_v40  ;;  %v4618_v22 = vld [vmem:[#allocation53_spill] sm:$0xff]  ;;  %v4620_v3 = vld [vmem:[#allocation91_spill] sm:$0xff] }
 0x1b5   : > { %v4109_v49 = vadd.f32 %v1190_v27, %v1033_v58  ;;  %2047 = vrot.lane.b32.xlu0 %v3583_v2, %s2886_s12  ;;  %v948_v9 = vsel %vm867_vm4, %v4611_v48, %v4555_v16  ;;  %v1073_v2 = vadd.f32 %v4613_v43, %v912_v6  ;;  %v847_v59 = vsel %vm706_vm3, %v4614_v23, %v4584_v52  ;;  %v4616_v52 = vld [vmem:[#allocation71_spill] sm:$0xff]  ;;  %v4621_v40 = vld [vmem:[#allocation92_spill] sm:$0xff]  ;;  %s2802_s12 = sshll.u32 %s2893_s21, 4  ;;  %s2803_s12 = int_to_ptr.vmem [resolvable:$false] %s2802_s12 }
 0x1b6   : > { %v1245_v38 = vpop.permute.xlu1 %1244  ;;  %v827_v57 = vsel %vm706_vm3, %v4615_v44, %v4574_v61  ;;  %v972_v0 = vadd.f32 %v968_v42, %v811_v55  ;;  %v952_v60 = vadd.f32 %v948_v9, %v791_v46  ;;  %v551_v13 = vadd.f32 %v3996_v20, %v3787_v7  ;;  %v4617_v61 = vld [vmem:[#allocation72_spill] sm:$0xff]  ;;  %v4622_v42 = vld [vmem:[#allocation93_spill] sm:$0xff]  ;;  %v4624_v44 = vld [vmem:[#allocation35_spill] sm:$0xff]  ;;  %s2804_s7 = scalar_lea.vmem %s2803_s12, 512  ;;  %p2805_p0 = scmp.lt.s32.totalorder %s4371_s24, %s2803_s12 }
 0x1b7   : > { %v1225_v51 = vpop.permute.xlu0 %1224  ;;  %v1250_v8 = vsel %vm1189_vm5, %v1245_v38, %v3939_v53  ;;  %v1008_v10 = vsel %vm867_vm4, %v4616_v52, %v4587_v47  ;;  %v988_v53 = vsel %vm867_vm4, %v4617_v61, %v4579_v37  ;;  %v851_v56 = vadd.f32 %v847_v59, %v690_v24  ;;  %p2806_p1 = scmp.lt.s32.totalorder %s2804_s7, %s2798_s29 }
 0x1b8   : > { %v1230_v16 = vsel %vm1189_vm5, %v1225_v51, %v3907_v29  ;;  %v4135_v15 = vadd.f32 %v1250_v8, %v1093_v33  ;;  %v831_v32 = vadd.f32 %v827_v57, %v670_v34  ;;  %v1133_v29 = vadd.f32 %v3770_v25, %v972_v0  ;;  %v4619_v25 = vld [vmem:[#allocation73_spill] sm:$0xff] }
 0x1b9   : > { %v4137_v26 = vadd.f32 %v1230_v16, %v1073_v2  ;;  %v1113_v35 = vadd.f32 %v3774_v30, %v952_v60  ;;  %v712_v36 = vadd.f32 %v708_v12, %v551_v13  ;;  %v869_v7 = vsel %vm867_vm4, %v4595_v17, %v4618_v22  ;;  %p2807_p2 = por %p2806_p1, %p2805_p0 }
 0x1ba   : > { %v1285_v58 = vpop.permute.xlu1 %1284  ;;  %v1012_v37 = vadd.f32 %v1008_v10, %v851_v56  ;;  %v992_v24 = vadd.f32 %v988_v53, %v831_v32  ;;  %v1030_v30 = vsel %vm1028_vm0, %v4601_v18, %v4619_v25  ;;  %v2892_v23 = vmov 0  }
 0x1bb   : > { %v1265_v50 = vpop.permute.xlu0 %1264  ;;  %v1290_v20 = vsel %vm1189_vm5, %v1285_v58, %v4008_v11  ;;  %v873_v1 = vadd.f32 %v869_v7, %v712_v36  ;;  %2778 = vset.pattern.permute.xlu1 %v2892_v23  ;;  %2779 = vset.pattern.permute.xlu0 %v2892_v23  ;;  %p2808_p3 = pnand %p2807_p2, %p2801_p13 }
 0x1bc   : > { %v1270_v47 = vsel %vm1189_vm5, %v1265_v50, %v3973_v62  ;;  %v1294_v45 = vadd.f32 %v1290_v20, %v1133_v29  ;;  %v1173_v27 = vadd.f32 %v4620_v3, %v1012_v37  ;;  %v1153_v6 = vadd.f32 %v4621_v40, %v992_v24 }
 0x1bd   : > { %v1274_v54 = vadd.f32 %v1270_v47, %v1113_v35  ;;  %v1034_v19 = vadd.f32 %v1030_v30, %v873_v1 }
 0x1be   : > { %v1325_v17 = vpop.permute.xlu1 %1324 }
 0x1bf   : > { %v1305_v34 = vpop.permute.xlu0 %1304  ;;  %v1330_v11 = vsel %vm1189_vm5, %v1325_v17, %v4067_v21  ;;  %v1195_v18 = vadd.f32 %v4622_v42, %v1034_v19  ;;  %v4623_v21 = vld [vmem:[#allocation21_spill] sm:$0xff] }
 0x1c0   : > { %v1310_v62 = vsel %vm1189_vm5, %v1305_v34, %v4039_v4  ;;  %v4165_v12 = vadd.f32 %v1330_v11, %v1173_v27  ;;  %v2445_v4 = vld [vmem:[%s4420_s4] sm:$0xff] }
 0x1c1   : > { %v1314_v63 = vadd.f32 %v1310_v62, %v1153_v6  ;;  %2448 = vperm.xlu1 %2778, %v2445_v4  }
 0x1c2   : > { %v1349_v48 = vpop.permute.xlu1 %1348 }
 0x1c3   : > { %v1347_v9 = vpop.permute.xlu0 %1346 }
 0x1c4   : > { %v1352_v55 = vsel %vm1350_vm6, %v1347_v9, %v1349_v48 }
 0x1c5   : > { %v1356_v46 = vadd.f32 %v1352_v55, %v1195_v18 }
 0x1c6   : > { %v1370_v14 = vpop.permute.xlu1 %1369 }
 0x1c7   : > { %v1368_v33 = vpop.permute.xlu0 %1367 }
 0x1c8   : > { %v1372_v43 = vsel %vm1350_vm6, %v1368_v33, %v1370_v14  ;;  %v4625_v14 = vld [vmem:[#allocation36_spill] sm:$0xff] }
 0x1c9   : > { %v1376_v2 = vadd.f32 %v1372_v43, %v4623_v21 }
 0x1ca   : > { %v1390_v38 = vpop.permute.xlu1 %1389 }
 0x1cb   : > { %v1388_v51 = vpop.permute.xlu0 %1387 }
 0x1cc   : > { %v1392_v59 = vsel %vm1350_vm6, %v1388_v51, %v1390_v38 }
 0x1cd   : > { %v1396_v57 = vadd.f32 %v1392_v59, %v4624_v44 }
 0x1ce   : > { %v1410_v8 = vpop.permute.xlu1 %1409 }
 0x1cf   : > { %v1408_v16 = vpop.permute.xlu0 %1407 }
 0x1d0   : > { %v1412_v55 = vsel %vm1350_vm6, %v1408_v16, %v1410_v8 }
 0x1d2   : > { %v1430_v0 = vpop.permute.xlu1 %1429 }
 0x1d3   : > { %v1428_v60 = vpop.permute.xlu0 %1427 }
 0x1d4   : > { %v1432_v44 = vsel %vm1350_vm6, %v1428_v60, %v1430_v0 }
 0x1d6   : > { %v1450_v13 = vpop.permute.xlu1 %1449 }
 0x1d7   : > { %v1448_v52 = vpop.permute.xlu0 %1447 }
 0x1d8   : > { %v1452_v8 = vsel %vm1350_vm6, %v1448_v52, %v1450_v13 }
 0x1da   : > { %v4176_v10 = vpop.permute.xlu1 %1469 }
 0x1db   : > { %v4178_v61 = vpop.permute.xlu0 %1467 }
 0x1de   : > { %v4180_v53 = vpop.permute.xlu1 %1489 }
 0x1df   : > { %v4182_v56 = vpop.permute.xlu0 %1487 }
 0x1e2   : > { %v1366_v32 = vpop.permute.xlu1 %1365 }
 0x1e3   : > { %v1345_v29 = vpop.permute.xlu0 %1344  ;;  %v1371_v35 = vsel %vm1350_vm6, %v1366_v32, %v1368_v33  ;;  %v1416_v33 = vadd.f32 %v1412_v55, %v4625_v14 }
 0x1e4   : > { %v1351_v58 = vsel %vm1350_vm6, %v1345_v29, %v1347_v9  ;;  %v4187_v50 = vadd.f32 %v1371_v35, %v4107_v41 }
 0x1e5   : > { %v4190_v36 = vadd.f32 %v1351_v58, %v4109_v49 }
 0x1e6   : > { %v1406_v22 = vpop.permute.xlu1 %1405 }
 0x1e7   : > { %v1386_v7 = vpop.permute.xlu0 %1385  ;;  %v1411_v20 = vsel %vm1350_vm6, %v1406_v22, %v1408_v16 }
 0x1e8   : > { %v1391_v47 = vsel %vm1350_vm6, %v1386_v7, %v1388_v51  ;;  %v4195_v37 = vadd.f32 %v1411_v20, %v4135_v15  ;;  %v1456_v7 = vadd.f32 %v1452_v8, %v4017_v39  ;;  %v1492_v39 = vsel %vm1350_vm6, %v4182_v56, %v4180_v53 }
 0x1e9   : > { %v4198_v24 = vadd.f32 %v1391_v47, %v4137_v26 }
 0x1ea   : > { %v1446_v25 = vpop.permute.xlu1 %1445 }
 0x1eb   : > { %v1426_v30 = vpop.permute.xlu0 %1425  ;;  %v1451_v41 = vsel %vm1350_vm6, %v1446_v25, %v1448_v52 }
 0x1ec   : > { %v1431_v1 = vsel %vm1350_vm6, %v1426_v30, %v1428_v60  ;;  %v4202_v49 = vadd.f32 %v1451_v41, %v1294_v45 }
 0x1ed   : > { %v4204_v3 = vadd.f32 %v1431_v1, %v1274_v54 }
 0x1ee   : > { %v4206_v27 = vpop.permute.xlu1 %1485 }
 0x1ef   : > { %v1466_v40 = vpop.permute.xlu0 %1465 }
 0x1f0   : > { %v1471_v15 = vsel %vm1350_vm6, %v1466_v40, %v4178_v61 }
 0x1f1   : > { %v4210_v6 = vadd.f32 %v1471_v15, %v1314_v63  ;;  %v1472_v15 = vsel %vm1350_vm6, %v4178_v61, %v4176_v10 }
 0x1f2   : > { %v1510_v26 = vpop.permute.xlu1 %1509 }
 0x1f3   : > { %v1508_v17 = vpop.permute.xlu0 %1507 }
 0x1f4   : > { %v1513_v34 = vsel %vm1511_vm7, %v1508_v17, %v1510_v26 }
 0x1f5   : > { %v1517_v19 = vadd.f32 %v1513_v34, %v1356_v46  ;;  %v1476_v34 = vadd.f32 %v1472_v15, %v4051_v28 }
 0x1f6   : > { %v1531_v11 = vpop.permute.xlu1 %1530 }
 0x1f7   : > { %v1529_v62 = vpop.permute.xlu0 %1528 }
 0x1f8   : > { %v1533_v45 = vsel %vm1511_vm7, %v1529_v62, %v1531_v11  ;;  %v1496_v11 = vadd.f32 %v1492_v39, %v4080_v31 }
 0x1f9   : > { %v1537_v54 = vadd.f32 %v1533_v45, %v1376_v2 }
 0x1fa   : > { %v1551_v48 = vpop.permute.xlu1 %1550 }
 0x1fb   : > { %v1659_v42 = vmin.f32 %v1517_v19, %v1537_v54  ;;  %v1661_v18 = vmax.f32 %v1517_v19, %v1537_v54  ;;  %v4214_v9 = vpop.permute.xlu0 %1548 }
 0x1fc   : > { %v1553_v63 = vsel %vm1511_vm7, %v4214_v9, %v1551_v48 }
 0x1fd   : > { %v1557_v38 = vadd.f32 %v1553_v63, %v1396_v57  ;;  %v4626_v57 = vld [vmem:[#allocation86_spill] sm:$0xff] }
 0x1fe   : > { %v1571_v43 = vpop.permute.xlu1 %1570  ;;  %v1436_v22 = vadd.f32 %v1432_v44, %v4626_v57 }
 0x1ff   : > { %v1569_v21 = vpop.permute.xlu0 %1568 }
 0x200   : > { %v1573_v4 = vsel %vm1511_vm7, %v1569_v21, %v1571_v43  ;;  %v1491_v43 = vsel %vm1350_vm6, %v4206_v27, %v4182_v56 }
 0x201   : > { %v1577_v51 = vadd.f32 %v1573_v4, %v1416_v33 }
 0x202   : > { %v1591_v23 = vpop.permute.xlu1 %1590 }
 0x203   : > { %v1663_v46 = vmin.f32 %v1557_v38, %v1577_v51  ;;  %v1665_v2 = vmax.f32 %v1557_v38, %v1577_v51  ;;  %v4221_v59 = vpop.permute.xlu0 %1588 }
 0x204   : > { %v1593_v35 = vsel %vm1511_vm7, %v4221_v59, %v1591_v23 }
 0x205   : > { %v4225_v16 = vmax.f32 %v1661_v18, %v1665_v2  ;;  %v4227_v32 = vmin.f32 %v1659_v42, %v1663_v46  ;;  %v1669_v29 = vmax.f32 %v1659_v42, %v1663_v46  ;;  %v1671_v58 = vmin.f32 %v1661_v18, %v1665_v2 }
 0x206   : > { %v1611_v20 = vpop.permute.xlu1 %1610  ;;  %v1597_v13 = vadd.f32 %v1593_v35, %v1436_v22 }
 0x207   : > { %v1609_v47 = vpop.permute.xlu0 %1608  ;;  %v1675_v0 = vmin.f32 %v1671_v58, %v1669_v29  ;;  %v1677_v60 = vmax.f32 %v1671_v58, %v1669_v29 }
 0x208   : > { %v1613_v25 = vsel %vm1511_vm7, %v1609_v47, %v1611_v20 }
 0x209   : > { %v1617_v52 = vadd.f32 %v1613_v25, %v1456_v7 }
 0x20a   : > { %v1631_v1 = vpop.permute.xlu1 %1630 }
 0x20b   : > { %v1679_v30 = vmin.f32 %v1597_v13, %v1617_v52  ;;  %v1681_v41 = vmax.f32 %v1597_v13, %v1617_v52  ;;  %v4234_v40 = vpop.permute.xlu0 %1628 }
 0x20c   : > { %v1633_v26 = vsel %vm1511_vm7, %v4234_v40, %v1631_v1 }
 0x20d   : > { %v1637_v42 = vadd.f32 %v1633_v26, %v1476_v34 }
 0x20e   : > { %v1651_v45 = vpop.permute.xlu1 %1650 }
 0x20f   : > { %v1649_v19 = vpop.permute.xlu0 %1648 }
 0x210   : > { %v1653_v54 = vsel %vm1511_vm7, %v1649_v19, %v1651_v45 }
 0x211   : > { %v1657_v18 = vadd.f32 %v1653_v54, %v1496_v11 }
 0x212   : > { %v1527_v10 = vpop.permute.xlu1 %1526 }
 0x213   : > { %v1683_v48 = vmin.f32 %v1637_v42, %v1657_v18  ;;  %v1685_v55 = vmax.f32 %v1637_v42, %v1657_v18  ;;  %v1506_v61 = vpop.permute.xlu0 %1505  ;;  %v1532_v63 = vsel %vm1511_vm7, %v1527_v10, %v1529_v62 }
 0x214   : > { %v1512_v53 = vsel %vm1511_vm7, %v1506_v61, %v1508_v17  ;;  %v1536_v28 = vadd.f32 %v1532_v63, %v4187_v50 }
 0x215   : > { %v4249_v14 = vmax.f32 %v1681_v41, %v1685_v55  ;;  %v1516_v31 = vadd.f32 %v1512_v53, %v4190_v36  ;;  %v4253_v33 = vmin.f32 %v1679_v30, %v1683_v48  ;;  %v1689_v4 = vmax.f32 %v1679_v30, %v1683_v48 }
 0x216   : > { %v1691_v38 = vmin.f32 %v1681_v41, %v1685_v55  ;;  %v1567_v2 = vpop.permute.xlu1 %1566 }
 0x217   : > { %v1658_v51 = vmin.f32 %v1516_v31, %v1536_v28  ;;  %v1660_v46 = vmax.f32 %v1516_v31, %v1536_v28  ;;  %v1547_v62 = vpop.permute.xlu0 %1546  ;;  %v1701_v17 = vmax.f32 %v4227_v32, %v4253_v33  ;;  %v1715_v50 = vmin.f32 %v4225_v16, %v4249_v14 }
 0x218   : > { %v1572_v36 = vsel %vm1511_vm7, %v1567_v2, %v1569_v21  ;;  %v1552_v23 = vsel %vm1511_vm7, %v1547_v62, %v4214_v9  ;;  %v1695_v44 = vmin.f32 %v1691_v38, %v1689_v4  ;;  %v1697_v8 = vmax.f32 %v1691_v38, %v1689_v4  ;;  %v2668_v62 = vld [vmem:[%s4419_s3 + $0x20] sm:$0xff] }
 0x219   : > { %v1576_v56 = vadd.f32 %v1572_v36, %v4195_v37  ;;  %v1556_v27 = vadd.f32 %v1552_v23, %v4198_v24  ;;  %v1699_v29 = vmin.f32 %v4227_v32, %v4253_v33  ;;  %v1717_v35 = vmax.f32 %v4225_v16, %v4249_v14  ;;  %v2672_v32 = vld [vmem:[%s4419_s3 + $0x30] sm:$0xff]  ;;  %v2666_v16 = vld [vmem:[%s4419_s3 + $0x18] sm:$0xff]  ;;  %v2676_v14 = vld [vmem:[%s4419_s3 + $0x40] sm:$0xff] }
 0x21a   : > { %v1703_v58 = vmin.f32 %v1677_v60, %v1697_v8  ;;  %v4271_v57 = vmin.f32 %v1675_v0, %v1695_v44  ;;  %v1713_v22 = vmax.f32 %v1675_v0, %v1695_v44  ;;  %v4273_v21 = vmax.f32 %v1677_v60, %v1697_v8  ;;  %v1607_v25 = vpop.permute.xlu1 %1606  ;;  %v2664_v33 = vld [vmem:[%s4419_s3 + $0x10] sm:$0xff] }
 0x21b   : > { %v1495_v9 = vadd.f32 %v1491_v43, %v4165_v12  ;;  %v1662_v7 = vmin.f32 %v1556_v27, %v1576_v56  ;;  %v1664_v20 = vmax.f32 %v1556_v27, %v1576_v56  ;;  %v1587_v37 = vpop.permute.xlu0 %1586  ;;  %v1612_v24 = vsel %vm1511_vm7, %v1607_v25, %v1609_v47 }
 0x21c   : > { %v1592_v13 = vsel %vm1511_vm7, %v1587_v37, %v4221_v59  ;;  %v4279_v52 = vmin.f32 %v1703_v58, %v1701_v17  ;;  %v4281_v30 = vmax.f32 %v1703_v58, %v1701_v17  ;;  %v1616_v12 = vadd.f32 %v1612_v24, %v4202_v49  ;;  %v2661_v24 = vld [vmem:[%s4419_s3 + $0x8] sm:$0xff] }
 0x21d   : > { %v4283_v41 = vmin.f32 %v1658_v51, %v1662_v7  ;;  %v1668_v0 = vmax.f32 %v1658_v51, %v1662_v7  ;;  %v1670_v60 = vmin.f32 %v1660_v46, %v1664_v20  ;;  %v4285_v1 = vmax.f32 %v1660_v46, %v1664_v20 }
 0x21e   : > { %v1596_v15 = vadd.f32 %v1592_v13, %v4204_v3  ;;  %v1723_v47 = vmin.f32 %v4271_v57, %v4279_v52  ;;  %v4291_v39 = vmin.f32 %v1715_v50, %v1713_v22  ;;  %v1647_v59 = vpop.permute.xlu1 %1646  ;;  %v4293_v45 = vmax.f32 %v1715_v50, %v1713_v22 }
 0x21f   : > { %v1627_v26 = vpop.permute.xlu0 %1626  ;;  %v1674_v34 = vmin.f32 %v1670_v60, %v1668_v0  ;;  %v1676_v11 = vmax.f32 %v1670_v60, %v1668_v0  ;;  %v1725_v54 = vmax.f32 %v4271_v57, %v4279_v52  ;;  %v1652_v49 = vsel %vm1511_vm7, %v1647_v59, %v1649_v19  ;;  %v1734_v0 = vld [vmem:[%s4419_s3] sm:$0xff] }
 0x220   : > { %v1678_v42 = vmin.f32 %v1596_v15, %v1616_v12  ;;  %v1680_v18 = vmax.f32 %v1596_v15, %v1616_v12  ;;  %1741 = vmatprep.subr.mxu1 %v1723_v47  ;;  %v1632_v3 = vsel %vm1511_vm7, %v1627_v26, %v4234_v40  ;;  %v1656_v48 = vadd.f32 %v1652_v49, %v1495_v9 }
 0x221   : > { %v1636_v55 = vadd.f32 %v1632_v3, %v4210_v6  ;;  %v1729_v10 = vmax.f32 %v4291_v39, %v4281_v30  ;;  %v1731_v61 = vmin.f32 %v4293_v45, %v4273_v21  ;;  %v1733_v63 = vmax.f32 %v4293_v45, %v4273_v21 }
 0x222   : > { %v1727_v53 = vmin.f32 %v4291_v39, %v4281_v30  ;;  %v2052_v43 = vpop.permute.xlu1 %2051 }
 0x223   : > { %v1682_v19 = vmin.f32 %v1636_v55, %v1656_v48  ;;  %v1684_v28 = vmax.f32 %v1636_v55, %v1656_v48  ;;  %v2050_v31 = vpop.permute.xlu0 %2049 }
 0x224   : > { %v2054_v40 = vsel %vm867_vm4, %v2050_v31, %v2052_v43 }
 0x225   : > { %v1686_v4 = vmin.f32 %v1678_v42, %v1682_v19  ;;  %v1688_v6 = vmax.f32 %v1678_v42, %v1682_v19  ;;  %v1690_v38 = vmin.f32 %v1680_v18, %v1684_v28  ;;  %v1692_v51 = vmax.f32 %v1680_v18, %v1684_v28  ;;  %2060 = vmatprep.subr.mxu0 %v2054_v40 }
 0x227   : > { %v1714_v46 = vmin.f32 %v4285_v1, %v1692_v51  ;;  %v2048_v2 = vpop.permute.xlu0 %2047  ;;  %v1694_v17 = vmin.f32 %v1690_v38, %v1688_v6  ;;  %v1696_v50 = vmax.f32 %v1690_v38, %v1688_v6  ;;  %v1700_v36 = vmax.f32 %v4283_v41, %v1686_v4 }
 0x228   : > { %v2053_v23 = vsel %vm867_vm4, %v2048_v2, %v2050_v31  ;;  %v1698_v44 = vmin.f32 %v4283_v41, %v1686_v4  ;;  %v1716_v8 = vmax.f32 %v4285_v1, %v1692_v51  ;;  %v2670_v41 = vld [vmem:[%s4419_s3 + $0x28] sm:$0xff] }
 0x229   : > { %2061 = vmatpush1.msra.mxu0 %v2053_v23  ;;  %v1702_v56 = vmin.f32 %v1676_v11, %v1696_v50  ;;  %v1710_v27 = vmin.f32 %v1674_v34, %v1694_v17  ;;  %v1712_v58 = vmax.f32 %v1674_v34, %v1694_v17  ;;  %v1704_v57 = vmax.f32 %v1676_v11, %v1696_v50 }
 0x22a   : > { %2669 = vmatmul.mubr.msk.f32.vlgmr.msra.gmra.mrb[0].mxu0 %vm1737_vm8, %v2668_v62  ;;  %2138 = vmatprep.subr.mxu0 %v1729_v10 }
 0x22b   : > { %v1706_v22 = vmin.f32 %v1702_v56, %v1700_v36  ;;  %v1708_v21 = vmax.f32 %v1702_v56, %v1700_v36  ;;  %v1718_v9 = vmin.f32 %v1714_v46, %v1712_v58  ;;  %2202 = vmatprep.mubr.f32.mxu0 %v2891_v5  ;;  %v1720_v7 = vmax.f32 %v1714_v46, %v1712_v58 }
 0x22d   : > { %v1722_v20 = vmin.f32 %v1710_v27, %v1706_v22  ;;  %v1724_v25 = vmax.f32 %v1710_v27, %v1706_v22  ;;  %v1728_v37 = vmax.f32 %v1718_v9, %v1708_v21  ;;  %v1730_v13 = vmin.f32 %v1720_v7, %v1704_v57 }
 0x22e   : > { %v1732_v52 = vmax.f32 %v1720_v7, %v1704_v57  ;;  %v1726_v30 = vmin.f32 %v1718_v9, %v1708_v21 }
 0x22f   : > { %1742 = vmatpush1.msra.mxu1 %v1722_v20  ;;  %2139 = vmatpush1.msra.mxu0 %v1728_v37 }
 0x230   : > { %2662 = vmatmul.mubr.msk.f32.vlgmr.msra.gmra.mrb[0].mxu1 %vm1737_vm8, %v2661_v24  ;;  %1815 = vmatprep.subr.mxu1 %v1699_v29  ;;  %v2674_v29 = vld [vmem:[%s4419_s3 + $0x38] sm:$0xff] }
 0x231   : > { %2216 = vmatprep.subr.mxu0 %v1731_v61  ;;  %1816 = vmatpush1.msra.mxu1 %v1698_v44 }
 0x232   : > { %1891 = vmatprep.subr.mxu1 %v1725_v54  ;;  %2671 = vmatmul.mubr.msk.f32.vlgmr.msra.gmra.mrb[0].mxu0 %vm1737_vm8, %v2670_v41 }
 0x233   : > { %2217 = vmatpush1.msra.mxu0 %v1730_v13  ;;  %1879 = vmatprep.mubr.f32.mxu1 %v2891_v5 }
 0x234   : > { %2294 = vmatprep.subr.mxu0 %v1733_v63  ;;  %2280 = vmatprep.mubr.f32.mxu0 %v2891_v5 }
 0x238   : > { %2663 = vmatmul.mubr.msk.f32.vlgmr.msra.gmra.mrb[0].mxu1 %vm1737_vm8, %v1734_v0 }
 0x239   : > { %1892 = vmatpush1.msra.mxu1 %v1724_v25  ;;  %1955 = vmatprep.mubr.f32.mxu1 %v2891_v5 }
 0x23a   : > { %1969 = vmatprep.subr.mxu1 %v1727_v53  ;;  %2673 = vmatmul.mubr.msk.f32.vlgmr.msra.gmra.mrb[0].mxu0 %vm1737_vm8, %v2672_v32 }
 0x23b   : > { %2295 = vmatpush1.msra.mxu0 %v1732_v52  ;;  %2358 = vmatprep.mubr.f32.mxu0 %v2891_v5 }
 0x23c   : > { %2372 = vmatprep.subr.mxu0 %v1717_v35 }
 0x240   : > { %2665 = vmatmul.mubr.msk.f32.vlgmr.msra.gmra.mrb[0].mxu1 %vm1737_vm8, %v2664_v33  ;;  %v2449_v12 = vpop.permute.xlu1 %2448 }
 0x241   : > { %1970 = vmatpush1.msra.mxu1 %v1726_v30  ;;  %2033 = vmatprep.mubr.f32.mxu1 %v2891_v5 }
 0x242   : > { %2675 = vmatmul.mubr.msk.f32.vlgmr.msra.gmra.mrb[0].mxu0 %vm1737_vm8, %v2674_v29 }
 0x243   : > { %2373 = vmatpush1.msra.mxu0 %v1716_v8  ;;  %2436 = vmatprep.mubr.f32.mxu0 %v2891_v5 }
 0x248   : > { %2667 = vmatmul.mubr.msk.f32.vlgmr.msra.gmra.mrb[0].mxu1 %vm1737_vm8, %v2666_v16 }
 0x24a   : > { %2677 = vmatmul.mubr.msk.f32.vlgmr.msra.gmra.mrb[0].mxu0 %vm1737_vm8, %v2676_v14 }
 0x31b   : > { %v2035_v35 = vpop.f32.mrb[0].mxu1 }
 0x31c   : > { %v2037_v60 = vpop.f32.mrb[1].mxu1 }
 0x31d   : > { %v2438_v1 = vpop.f32.mrb[0].mxu0 }
 0x31e   : > { %v2686_v5 = vadd.f32 %v2438_v1, %v2035_v35  ;;  %v2440_v15 = vpop.f32.mrb[1].mxu0 }
 0x31f   : > { %v2687_v47 = vadd.f32 %v2440_v15, %v2037_v60 }
 0x320   : > { %v2451_v39 = vadd.f32 %v2686_v5, %v2449_v12 }
 0x321   : > { %v2452_v59 = vadd.f32 %v2687_v47, %v2449_v12 }
 0x322   : > { %2453 = vst [vmem:[%s297_s17] sm:$0xff] %v2451_v39 }
 0x323   : > { %2454 = vst [vmem:[%s297_s17 + $0x8] sm:$0xff] %v2452_v59 }
 0x324   : > { %2811 = shalt.err (!%p2808_p3)
}
 0x325   : > { %s2812_s8 = scalar_lea.hbm %s4369_s27, 256  ;;  %s2816_s13 = scalar_lea.hbm %s4421_s5, 512 }
 0x326   : > { %p2813_p5 = scmp.ne.s32.totalorder %s4369_s27, %s2812_s8  ;;  %p2817_p9 = scmp.lt.u32.totalorder %s4369_s27, %s4421_s5 }
 0x327   : > { %p2818_p12 = scmp.lt.u32.totalorder %s2816_s13, %s2812_s8  ;;  %p2820_p11 = scmp.lt.u32.totalorder %s2812_s8, %s4369_s27 }
 0x328   : > { %p2814_p6 = pnand %p2813_p5, %p2964_p4 }
 0x329   : > { %p2819_p10 = por %p2818_p12, %p2817_p9 }
 0x32a   : > { %p2815_p7 = pneg %p2814_p6 }
 0x32b   : > { %p2821_p13 = por %p2820_p11, %p2819_p10 }
 0x32d   : > { %p2822_p0 = pnand %p2821_p13, %p2815_p7 }
 0x32f   : > { %2825 = shalt.err (!%p2822_p0)
}
 0x330   : > { %2706 = dma.vmem_to_hbm [thread:$0]  (%p2964_p4), %s4371_s24, 256, %s4369_s27, %s2456_s9  }
 0x331 PF: > { %p2718_p1 = scmp.ge.s32.totalorder %s2880_s23, 2  ;;  %s2484_s17 = sand.u32 1, %s2860_s18  }
 0x332   : > { %s2485_s15 = scalar_lea.sflag [#allocation4], %s2484_s17 }
 0x333   : > { %p2713_p2 = pnand %p2718_p1, %p2971_p8 }
 0x335   : > { %2855 = dma.done.wait (!%p2713_p2), %s2485_s15, 256  }
 0x336   : > { %2857 = vsyncadd (!%p2713_p2), %s2485_s15, 4294967040  ;;  %s19_s23 = sadd.s32 1, %s2880_s23   ;;  %s4627_s18 = smov %s2864_s19 }
 0x337   : > { %p16_p3 = scmp.ge.s32.totalorder %s19_s23, 4   ;;  %s4628_s19 = smov %s2868_s20 }
 0x338   : > { %s4629_s20 = smov %s2977_s6  ;;  %s4630_s21 = smov %s2876_s22 }
 0x339   : > { %s4631_s22 = smov %s4633_s26  ;;  %18 = sbr.rel (!%p16_p3) target bundleno = 5 (0x5), region = 91 }
 0x340   :  { %2490 = vsyncpa [#allocation4], 1 }
 0x341   :  { %2492 = vsyncpa [#allocation4 + $0x1], 1 }
 0x342   :  { %2493 = vsyncpa [#allocation5], 1 }
 0x343   :  { %2495 = vsyncpa [#allocation5 + $0x1], 1 }

</bundles_post_ra>
